<compile_context>
chip_gen: v7x
topology: tpu7x:2x2x1
jax: 0.10.0
libtpu: 0.0.40
codegen_flags: <defaults>
</compile_context>

<pallas_src>
import math

import jax
import jax.numpy as jnp
from jax.experimental import pallas as pl
from jax.experimental.pallas import tpu as pltpu


# ----------------------------------------------------------------------------
# Fused Pallas kernel (wavefront LSTM stack + MLP head)
# ----------------------------------------------------------------------------
def make_fused_lstm_kernel(num_layers, T, Bp, H):
    """Builds the fused kernel for static (num_layers, T, Bp, H)."""

    def kernel(*refs):
        # ---- unpack refs ----------------------------------------------------
        x_ref = refs[0]                                   # (T*Bp, F): row t*Bp+b == x[b, t, :]
        idx = 1
        lstm_refs = []
        for _ in range(num_layers):
            lstm_refs.append(tuple(refs[idx:idx + 3]))    # (wih, whh, b_combined), g-cols pre-scaled x2
            idx += 3
        w1_ref, b1_ref, w2_ref, b2_ref, w3_ref, b3_ref = refs[idx:idx + 6]
        idx += 6
        out_ref = refs[idx]                               # (Bp, Cp) lane-dense
        xproj_scr = refs[idx + 1]                         # (T*Bp, 4H)

        # Hoisted layer-0 input projection: ONE big MXU matmul over all timesteps,
        # combined bias folded in.  Off the serial critical path.
        wih0_ref, _, b0_ref = lstm_refs[0]
        xproj_scr[...] = (
            jnp.dot(x_ref[...], wih0_ref[...], preferred_element_type=jnp.float32)
            + b0_ref[...]
        )

        # Recurrent / upper-layer weights read once, resident for the whole recurrence.
        whh = [lstm_refs[l][1][...] for l in range(num_layers)]          # (H, 4H) each
        wih_up = [lstm_refs[l][0][...] for l in range(1, num_layers)]    # (H, 4H) each
        b_up = [lstm_refs[l][2][...] for l in range(1, num_layers)]      # (1, 4H) each

        def lstm_step(x_gates, h_prev, c_prev, whh_l):
            gates = x_gates + jnp.dot(h_prev, whh_l,
                                      preferred_element_type=jnp.float32)   # (Bp, 4H)
            # Single EUP pass over the full lane-dense gates tile; g reconstructed
            # via tanh(x) = 2*sigmoid(2x) - 1 (g columns were pre-scaled by 2).
            sig = jax.nn.sigmoid(gates)
            i_g = sig[:, 0 * H:1 * H]
            f_g = sig[:, 1 * H:2 * H]
            g_g = 2.0 * sig[:, 2 * H:3 * H] - 1.0
            o_g = sig[:, 3 * H:4 * H]
            c_new = f_g * c_prev + i_g * g_g
            h_new = o_g * jnp.tanh(c_new)
            return h_new, c_new

        # h/c states live as traced values (vreg-resident; (Bp, H) = 1 vreg each).
        h = [jnp.zeros((Bp, H), jnp.float32) for _ in range(num_layers)]
        c = [jnp.zeros((Bp, H), jnp.float32) for _ in range(num_layers)]

        # Wavefront schedule: layer l, timestep t runs at wave w = t + l.
        # Serial chain = T + L - 1 cell steps (vs. L*T); per-wave layer steps are
        # independent, so their MXU pushes overlap.  Layers processed top-down so
        # layer l reads layer l-1's h from the previous wave before it is updated.
        for w in range(T + num_layers - 1):
            for l in reversed(range(num_layers)):
                t = w - l
                if 0 <= t < T:
                    if l == 0:
                        xg = xproj_scr[t * Bp:(t + 1) * Bp, :]   # 8-row aligned static slice
                    else:
                        xg = jnp.dot(h[l - 1], wih_up[l - 1],
                                     preferred_element_type=jnp.float32) + b_up[l - 1]
                    h[l], c[l] = lstm_step(xg, h[l], c[l], whh[l])

        # ---- MLP head on the last hidden state of the top layer ------------------
        z = jnp.dot(h[-1], w1_ref[...], preferred_element_type=jnp.float32) + b1_ref[...]
        z = jnp.maximum(z, 0.0)
        z = jnp.dot(z, w2_ref[...], preferred_element_type=jnp.float32) + b2_ref[...]
        z = jnp.maximum(z, 0.0)
        logits = jnp.dot(z, w3_ref[...], preferred_element_type=jnp.float32) + b3_ref[...]
        # Padded class columns carry bias -1e30 -> exp underflows to 0 in the denom.
        m = jnp.max(logits, axis=1, keepdims=True)
        e = jnp.exp(logits - m)
        denom = jnp.sum(e, axis=1, keepdims=True)
        out_ref[...] = e * pl.reciprocal(denom)   # exact: rows sum to 1

    return kernel


# ----------------------------------------------------------------------------
# Wrapper
# ----------------------------------------------------------------------------
def lstm_model_forward(x, params):
    """x: (B, T, F) float32 (batch_first). Returns softmax probs (B, num_classes)."""
    B, T, F = x.shape
    lstm_layers = params["lstm_layers"]
    num_layers = len(lstm_layers)
    H = lstm_layers[0][1].shape[0]            # whh is (H, 4H)
    w1, b1 = params["fc1"]
    w2, b2 = params["fc2"]
    w3, b3 = params["fc3"]
    C = w3.shape[1]

    Bp = max(8, ((B + 7) // 8) * 8)           # full sublane tile
    Cp = max(128, ((C + 127) // 128) * 128)   # lane-dense output

    # Pad batch, then time-major rows: row (t*Bp + b) holds x[b, t, :].
    x_p = jnp.zeros((Bp, T, F), jnp.float32).at[:B].set(x.astype(jnp.float32))
    x_rows = jnp.transpose(x_p, (1, 0, 2)).reshape(T * Bp, F)

    # Pre-scale g-gate columns by 2 so tanh(x) = 2*sigmoid(2x) - 1 in the kernel.
    gscale = jnp.ones((1, 4 * H), jnp.float32).at[:, 2 * H:3 * H].set(2.0)
    flat_lstm = []
    for (wih, whh, b) in lstm_layers:
        flat_lstm += [wih * gscale, whh * gscale, b * gscale]

    # Lane-dense fc3: zero weights / -1e30 bias on pad columns (softmax ignores them).
    w3_p = jnp.zeros((w3.shape[0], Cp), jnp.float32).at[:, :C].set(w3)
    b3_p = jnp.full((1, Cp), -1e30, jnp.float32).at[:, :C].set(b3)

    kernel = make_fused_lstm_kernel(num_layers, T, Bp, H)
    out = pl.pallas_call(
        kernel,
        out_shape=jax.ShapeDtypeStruct((Bp, Cp), jnp.float32),
        scratch_shapes=[
            pltpu.VMEM((T * Bp, 4 * H), jnp.float32),   # hoisted layer-0 input projections
        ],
    )(x_rows, *flat_lstm, w1, b1, w2, b2, w3_p, b3_p)
    return out[:B, :C]


# ----------------------------------------------------------------------------
# Pure-JAX reference (for correctness check; uses the unscaled params)
# ----------------------------------------------------------------------------
def reference_forward(x, params):
    seq = jnp.transpose(x, (1, 0, 2)).astype(jnp.float32)   # (T, B, F)
    for (wih, whh, b) in params["lstm_layers"]:
        H = whh.shape[0]
        Bsz = seq.shape[1]
        h = jnp.zeros((Bsz, H), jnp.float32)
        c = jnp.zeros((Bsz, H), jnp.float32)
        outs = []
        for t in range(seq.shape[0]):
            gates = seq[t] @ wih + h @ whh + b
            i = jax.nn.sigmoid(gates[:, 0 * H:1 * H])
            f = jax.nn.sigmoid(gates[:, 1 * H:2 * H])
            g = jnp.tanh(gates[:, 2 * H:3 * H])
            o = jax.nn.sigmoid(gates[:, 3 * H:4 * H])
            c = f * c + i * g
            h = o * jnp.tanh(c)
            outs.append(h)
        seq = jnp.stack(outs, axis=0)
    h_last = seq[-1]
    w1, b1 = params["fc1"]
    w2, b2 = params["fc2"]
    w3, b3 = params["fc3"]
    z = jnp.maximum(h_last @ w1 + b1, 0.0)
    z = jnp.maximum(z @ w2 + b2, 0.0)
    logits = z @ w3 + b3
    return jax.nn.softmax(logits, axis=1)


# ----------------------------------------------------------------------------
# Deterministic parameter construction (matches nn.LSTM / nn.Linear shapes)
# ----------------------------------------------------------------------------
def init_params(key, input_size, hidden_size, num_layers, num_classes):
    params = {"lstm_layers": []}
    H = hidden_size
    k_lstm = 1.0 / math.sqrt(H)

    for layer in range(num_layers):
        d_in = input_size if layer == 0 else H
        key, k1, k2, k3, k4 = jax.random.split(key, 5)
        # PyTorch shapes: weight_ih (4H, d_in), weight_hh (4H, H), biases (4H,)
        w_ih = jax.random.uniform(k1, (4 * H, d_in), jnp.float32, -k_lstm, k_lstm)
        w_hh = jax.random.uniform(k2, (4 * H, H), jnp.float32, -k_lstm, k_lstm)
        b_ih = jax.random.uniform(k3, (4 * H,), jnp.float32, -k_lstm, k_lstm)
        b_hh = jax.random.uniform(k4, (4 * H,), jnp.float32, -k_lstm, k_lstm)
        # transpose so the kernel does x @ W; combine the two biases
        params["lstm_layers"].append(
            (w_ih.T, w_hh.T, (b_ih + b_hh).reshape(1, 4 * H))
        )

    def linear(key, d_in, d_out):
        k = 1.0 / math.sqrt(d_in)
        key, kw, kb = jax.random.split(key, 3)
        w = jax.random.uniform(kw, (d_out, d_in), jnp.float32, -k, k)
        b = jax.random.uniform(kb, (d_out,), jnp.float32, -k, k)
        return key, (w.T, b.reshape(1, d_out))

    key, params["fc1"] = linear(key, H, 256)
    key, params["fc2"] = linear(key, 256, 128)
    key, params["fc3"] = linear(key, 128, num_classes)
    return params


if __name__ == "__main__":
    hyperparams = {
        "lstm": {"hidden_size": 32, "num_layers": 2},
        "num_classes": 10,
    }
    B, T, F = 2, 8, 6  # input_size fixed to 6 by the module

    key = jax.random.PRNGKey(0)
    key, kx = jax.random.split(key)
    x = jax.random.normal(kx, (B, T, F), jnp.float32)

    params = init_params(
        key,
        input_size=F,
        hidden_size=hyperparams["lstm"]["hidden_size"],
        num_layers=hyperparams["lstm"]["num_layers"],
        num_classes=hyperparams["num_classes"],
    )

    fwd = jax.jit(lstm_model_forward)   # fuse the tiny pad/transpose/param-prep ops
    out = jax.block_until_ready(fwd(x, params))
    ref = jax.block_until_ready(reference_forward(x, params))

    assert out.shape == (B, hyperparams["num_classes"])
    assert jnp.allclose(jnp.sum(out, axis=1), 1.0, atol=2e-2)
    assert jnp.allclose(out, ref, atol=2e-3, rtol=2e-2)
    print("KERNEL_OK")
</pallas_src>

<mosaic_0001>
module attributes {stable_mosaic.version = 11 : i64} {
  func.func @kernel(%arg0: memref<64x6xf32, #tpu.memory_space<vmem>>, %arg1: memref<6x128xf32, #tpu.memory_space<vmem>>, %arg2: memref<32x128xf32, #tpu.memory_space<vmem>>, %arg3: memref<1x128xf32, #tpu.memory_space<vmem>>, %arg4: memref<32x128xf32, #tpu.memory_space<vmem>>, %arg5: memref<32x128xf32, #tpu.memory_space<vmem>>, %arg6: memref<1x128xf32, #tpu.memory_space<vmem>>, %arg7: memref<32x256xf32, #tpu.memory_space<vmem>>, %arg8: memref<1x256xf32, #tpu.memory_space<vmem>>, %arg9: memref<256x128xf32, #tpu.memory_space<vmem>>, %arg10: memref<1x128xf32, #tpu.memory_space<vmem>>, %arg11: memref<128x128xf32, #tpu.memory_space<vmem>>, %arg12: memref<1x128xf32, #tpu.memory_space<vmem>>, %arg13: memref<8x128xf32, #tpu.memory_space<vmem>>, %arg14: memref<64x128xf32, #tpu.memory_space<vmem>>) attributes {dimension_semantics = [], scalar_prefetch = 0 : i64, scratch_operands = 1 : i64, tpu.core_type = #tpu.core_type<tc>} {
    %c0 = arith.constant 0 : index
    %c0_0 = arith.constant 0 : index
    %0 = vector.load %arg0[%c0, %c0_0] : memref<64x6xf32, #tpu.memory_space<vmem>>, vector<64x6xf32>
    %c0_1 = arith.constant 0 : index
    %c0_2 = arith.constant 0 : index
    %1 = vector.load %arg1[%c0_1, %c0_2] : memref<6x128xf32, #tpu.memory_space<vmem>>, vector<6x128xf32>
    %cst = arith.constant dense<0.000000e+00> : vector<64x128xf32>
    %2 = tpu.matmul %0, %1, %cst {dimension_numbers = #tpu.dot_dimension_numbers<[1], [0], [0], [1], [0, 0, 1, 1], [], []>} : vector<64x6xf32>, vector<6x128xf32>, vector<64x128xf32> -> vector<64x128xf32>
    %c0_3 = arith.constant 0 : index
    %c0_4 = arith.constant 0 : index
    %3 = vector.load %arg3[%c0_3, %c0_4] : memref<1x128xf32, #tpu.memory_space<vmem>>, vector<1x128xf32>
    %4 = vector.broadcast %3 : vector<1x128xf32> to vector<64x128xf32>
    %5 = arith.addf %2, %4 : vector<64x128xf32>
    %c0_5 = arith.constant 0 : index
    %c0_6 = arith.constant 0 : index
    %6 = vector.load %arg14[%c0_5, %c0_6] : memref<64x128xf32, #tpu.memory_space<vmem>>, vector<64x128xf32>
    tpu.vector_store %arg14[%c0_5, %c0_6], %5 {strides = array<i32>} : memref<64x128xf32, #tpu.memory_space<vmem>>, vector<64x128xf32>,
    %c0_7 = arith.constant 0 : index
    %c0_8 = arith.constant 0 : index
    %7 = vector.load %arg2[%c0_7, %c0_8] : memref<32x128xf32, #tpu.memory_space<vmem>>, vector<32x128xf32>
    %c0_9 = arith.constant 0 : index
    %c0_10 = arith.constant 0 : index
    %8 = vector.load %arg5[%c0_9, %c0_10] : memref<32x128xf32, #tpu.memory_space<vmem>>, vector<32x128xf32>
    %c0_11 = arith.constant 0 : index
    %c0_12 = arith.constant 0 : index
    %9 = vector.load %arg4[%c0_11, %c0_12] : memref<32x128xf32, #tpu.memory_space<vmem>>, vector<32x128xf32>
    %c0_13 = arith.constant 0 : index
    %c0_14 = arith.constant 0 : index
    %10 = vector.load %arg6[%c0_13, %c0_14] : memref<1x128xf32, #tpu.memory_space<vmem>>, vector<1x128xf32>
    %cst_15 = arith.constant 0.000000e+00 : f32
    %11 = vector.broadcast %cst_15 : f32 to vector<8x32xf32>
    %cst_16 = arith.constant 0.000000e+00 : f32
    %12 = vector.broadcast %cst_16 : f32 to vector<8x32xf32>
    %cst_17 = arith.constant 0.000000e+00 : f32
    %13 = vector.broadcast %cst_17 : f32 to vector<8x32xf32>
    %cst_18 = arith.constant 0.000000e+00 : f32
    %14 = vector.broadcast %cst_18 : f32 to vector<8x32xf32>
    %c0_19 = arith.constant 0 : index
    %c0_20 = arith.constant 0 : index
    %15 = vector.load %arg14[%c0_19, %c0_20] : memref<64x128xf32, #tpu.memory_space<vmem>>, vector<8x128xf32>
    %cst_21 = arith.constant dense<0.000000e+00> : vector<8x128xf32>
    %16 = tpu.matmul %11, %7, %cst_21 {dimension_numbers = #tpu.dot_dimension_numbers<[1], [0], [0], [1], [0, 0, 1, 1], [], []>} : vector<8x32xf32>, vector<32x128xf32>, vector<8x128xf32> -> vector<8x128xf32>
    %17 = arith.addf %15, %16 : vector<8x128xf32>
    %18 = arith.negf %17 : vector<8x128xf32>
    %19 = math.exp %18 : vector<8x128xf32>
    %cst_22 = arith.constant 1.000000e+00 : f32
    %20 = vector.broadcast %cst_22 : f32 to vector<8x128xf32>
    %21 = arith.addf %20, %19 : vector<8x128xf32>
    %22 = arith.divf %20, %21 : vector<8x128xf32>
    %23 = vector.extract_strided_slice %22 {offsets = [0, 0], sizes = [8, 32], strides = [1, 1]} : vector<8x128xf32> to vector<8x32xf32>
    %24 = vector.extract_strided_slice %22 {offsets = [0, 32], sizes = [8, 32], strides = [1, 1]} : vector<8x128xf32> to vector<8x32xf32>
    %25 = vector.extract_strided_slice %22 {offsets = [0, 64], sizes = [8, 32], strides = [1, 1]} : vector<8x128xf32> to vector<8x32xf32>
    %cst_23 = arith.constant 2.000000e+00 : f32
    %26 = vector.broadcast %cst_23 : f32 to vector<8x32xf32>
    %27 = arith.mulf %26, %25 : vector<8x32xf32>
    %cst_24 = arith.constant 1.000000e+00 : f32
    %28 = vector.broadcast %cst_24 : f32 to vector<8x32xf32>
    %29 = arith.subf %27, %28 : vector<8x32xf32>
    %30 = vector.extract_strided_slice %22 {offsets = [0, 96], sizes = [8, 32], strides = [1, 1]} : vector<8x128xf32> to vector<8x32xf32>
    %31 = arith.mulf %24, %13 : vector<8x32xf32>
    %32 = arith.mulf %23, %29 : vector<8x32xf32>
    %33 = arith.addf %31, %32 : vector<8x32xf32>
    %34 = math.tanh %33 : vector<8x32xf32>
    %35 = arith.mulf %30, %34 : vector<8x32xf32>
    %cst_25 = arith.constant dense<0.000000e+00> : vector<8x128xf32>
    %36 = tpu.matmul %35, %9, %cst_25 {dimension_numbers = #tpu.dot_dimension_numbers<[1], [0], [0], [1], [0, 0, 1, 1], [], []>} : vector<8x32xf32>, vector<32x128xf32>, vector<8x128xf32> -> vector<8x128xf32>
    %37 = vector.broadcast %10 : vector<1x128xf32> to vector<8x128xf32>
    %38 = arith.addf %36, %37 : vector<8x128xf32>
    %cst_26 = arith.constant dense<0.000000e+00> : vector<8x128xf32>
    %39 = tpu.matmul %12, %8, %cst_26 {dimension_numbers = #tpu.dot_dimension_numbers<[1], [0], [0], [1], [0, 0, 1, 1], [], []>} : vector<8x32xf32>, vector<32x128xf32>, vector<8x128xf32> -> vector<8x128xf32>
    %40 = arith.addf %38, %39 : vector<8x128xf32>
    %41 = arith.negf %40 : vector<8x128xf32>
    %42 = math.exp %41 : vector<8x128xf32>
    %cst_27 = arith.constant 1.000000e+00 : f32
    %43 = vector.broadcast %cst_27 : f32 to vector<8x128xf32>
    %44 = arith.addf %43, %42 : vector<8x128xf32>
    %45 = arith.divf %43, %44 : vector<8x128xf32>
    %46 = vector.extract_strided_slice %45 {offsets = [0, 0], sizes = [8, 32], strides = [1, 1]} : vector<8x128xf32> to vector<8x32xf32>
    %47 = vector.extract_strided_slice %45 {offsets = [0, 32], sizes = [8, 32], strides = [1, 1]} : vector<8x128xf32> to vector<8x32xf32>
    %48 = vector.extract_strided_slice %45 {offsets = [0, 64], sizes = [8, 32], strides = [1, 1]} : vector<8x128xf32> to vector<8x32xf32>
    %cst_28 = arith.constant 2.000000e+00 : f32
    %49 = vector.broadcast %cst_28 : f32 to vector<8x32xf32>
    %50 = arith.mulf %49, %48 : vector<8x32xf32>
    %cst_29 = arith.constant 1.000000e+00 : f32
    %51 = vector.broadcast %cst_29 : f32 to vector<8x32xf32>
    %52 = arith.subf %50, %51 : vector<8x32xf32>
    %53 = vector.extract_strided_slice %45 {offsets = [0, 96], sizes = [8, 32], strides = [1, 1]} : vector<8x128xf32> to vector<8x32xf32>
    %54 = arith.mulf %47, %14 : vector<8x32xf32>
    %55 = arith.mulf %46, %52 : vector<8x32xf32>
    %56 = arith.addf %54, %55 : vector<8x32xf32>
    %57 = math.tanh %56 : vector<8x32xf32>
    %58 = arith.mulf %53, %57 : vector<8x32xf32>
    %c8 = arith.constant 8 : index
    %c0_30 = arith.constant 0 : index
    %59 = vector.load %arg14[%c8, %c0_30] : memref<64x128xf32, #tpu.memory_space<vmem>>, vector<8x128xf32>
    %cst_31 = arith.constant dense<0.000000e+00> : vector<8x128xf32>
    %60 = tpu.matmul %35, %7, %cst_31 {dimension_numbers = #tpu.dot_dimension_numbers<[1], [0], [0], [1], [0, 0, 1, 1], [], []>} : vector<8x32xf32>, vector<32x128xf32>, vector<8x128xf32> -> vector<8x128xf32>
    %61 = arith.addf %59, %60 : vector<8x128xf32>
    %62 = arith.negf %61 : vector<8x128xf32>
    %63 = math.exp %62 : vector<8x128xf32>
    %cst_32 = arith.constant 1.000000e+00 : f32
    %64 = vector.broadcast %cst_32 : f32 to vector<8x128xf32>
    %65 = arith.addf %64, %63 : vector<8x128xf32>
    %66 = arith.divf %64, %65 : vector<8x128xf32>
    %67 = vector.extract_strided_slice %66 {offsets = [0, 0], sizes = [8, 32], strides = [1, 1]} : vector<8x128xf32> to vector<8x32xf32>
    %68 = vector.extract_strided_slice %66 {offsets = [0, 32], sizes = [8, 32], strides = [1, 1]} : vector<8x128xf32> to vector<8x32xf32>
    %69 = vector.extract_strided_slice %66 {offsets = [0, 64], sizes = [8, 32], strides = [1, 1]} : vector<8x128xf32> to vector<8x32xf32>
    %cst_33 = arith.constant 2.000000e+00 : f32
    %70 = vector.broadcast %cst_33 : f32 to vector<8x32xf32>
    %71 = arith.mulf %70, %69 : vector<8x32xf32>
    %cst_34 = arith.constant 1.000000e+00 : f32
    %72 = vector.broadcast %cst_34 : f32 to vector<8x32xf32>
    %73 = arith.subf %71, %72 : vector<8x32xf32>
    %74 = vector.extract_strided_slice %66 {offsets = [0, 96], sizes = [8, 32], strides = [1, 1]} : vector<8x128xf32> to vector<8x32xf32>
    %75 = arith.mulf %68, %33 : vector<8x32xf32>
    %76 = arith.mulf %67, %73 : vector<8x32xf32>
    %77 = arith.addf %75, %76 : vector<8x32xf32>
    %78 = math.tanh %77 : vector<8x32xf32>
    %79 = arith.mulf %74, %78 : vector<8x32xf32>
    %cst_35 = arith.constant dense<0.000000e+00> : vector<8x128xf32>
    %80 = tpu.matmul %79, %9, %cst_35 {dimension_numbers = #tpu.dot_dimension_numbers<[1], [0], [0], [1], [0, 0, 1, 1], [], []>} : vector<8x32xf32>, vector<32x128xf32>, vector<8x128xf32> -> vector<8x128xf32>
    %81 = vector.broadcast %10 : vector<1x128xf32> to vector<8x128xf32>
    %82 = arith.addf %80, %81 : vector<8x128xf32>
    %cst_36 = arith.constant dense<0.000000e+00> : vector<8x128xf32>
    %83 = tpu.matmul %58, %8, %cst_36 {dimension_numbers = #tpu.dot_dimension_numbers<[1], [0], [0], [1], [0, 0, 1, 1], [], []>} : vector<8x32xf32>, vector<32x128xf32>, vector<8x128xf32> -> vector<8x128xf32>
    %84 = arith.addf %82, %83 : vector<8x128xf32>
    %85 = arith.negf %84 : vector<8x128xf32>
    %86 = math.exp %85 : vector<8x128xf32>
    %cst_37 = arith.constant 1.000000e+00 : f32
    %87 = vector.broadcast %cst_37 : f32 to vector<8x128xf32>
    %88 = arith.addf %87, %86 : vector<8x128xf32>
    %89 = arith.divf %87, %88 : vector<8x128xf32>
    %90 = vector.extract_strided_slice %89 {offsets = [0, 0], sizes = [8, 32], strides = [1, 1]} : vector<8x128xf32> to vector<8x32xf32>
    %91 = vector.extract_strided_slice %89 {offsets = [0, 32], sizes = [8, 32], strides = [1, 1]} : vector<8x128xf32> to vector<8x32xf32>
    %92 = vector.extract_strided_slice %89 {offsets = [0, 64], sizes = [8, 32], strides = [1, 1]} : vector<8x128xf32> to vector<8x32xf32>
    %cst_38 = arith.constant 2.000000e+00 : f32
    %93 = vector.broadcast %cst_38 : f32 to vector<8x32xf32>
    %94 = arith.mulf %93, %92 : vector<8x32xf32>
    %cst_39 = arith.constant 1.000000e+00 : f32
    %95 = vector.broadcast %cst_39 : f32 to vector<8x32xf32>
    %96 = arith.subf %94, %95 : vector<8x32xf32>
    %97 = vector.extract_strided_slice %89 {offsets = [0, 96], sizes = [8, 32], strides = [1, 1]} : vector<8x128xf32> to vector<8x32xf32>
    %98 = arith.mulf %91, %56 : vector<8x32xf32>
    %99 = arith.mulf %90, %96 : vector<8x32xf32>
    %100 = arith.addf %98, %99 : vector<8x32xf32>
    %101 = math.tanh %100 : vector<8x32xf32>
    %102 = arith.mulf %97, %101 : vector<8x32xf32>
    %c16 = arith.constant 16 : index
    %c0_40 = arith.constant 0 : index
    %103 = vector.load %arg14[%c16, %c0_40] : memref<64x128xf32, #tpu.memory_space<vmem>>, vector<8x128xf32>
    %cst_41 = arith.constant dense<0.000000e+00> : vector<8x128xf32>
    %104 = tpu.matmul %79, %7, %cst_41 {dimension_numbers = #tpu.dot_dimension_numbers<[1], [0], [0], [1], [0, 0, 1, 1], [], []>} : vector<8x32xf32>, vector<32x128xf32>, vector<8x128xf32> -> vector<8x128xf32>
    %105 = arith.addf %103, %104 : vector<8x128xf32>
    %106 = arith.negf %105 : vector<8x128xf32>
    %107 = math.exp %106 : vector<8x128xf32>
    %cst_42 = arith.constant 1.000000e+00 : f32
    %108 = vector.broadcast %cst_42 : f32 to vector<8x128xf32>
    %109 = arith.addf %108, %107 : vector<8x128xf32>
    %110 = arith.divf %108, %109 : vector<8x128xf32>
    %111 = vector.extract_strided_slice %110 {offsets = [0, 0], sizes = [8, 32], strides = [1, 1]} : vector<8x128xf32> to vector<8x32xf32>
    %112 = vector.extract_strided_slice %110 {offsets = [0, 32], sizes = [8, 32], strides = [1, 1]} : vector<8x128xf32> to vector<8x32xf32>
    %113 = vector.extract_strided_slice %110 {offsets = [0, 64], sizes = [8, 32], strides = [1, 1]} : vector<8x128xf32> to vector<8x32xf32>
    %cst_43 = arith.constant 2.000000e+00 : f32
    %114 = vector.broadcast %cst_43 : f32 to vector<8x32xf32>
    %115 = arith.mulf %114, %113 : vector<8x32xf32>
    %cst_44 = arith.constant 1.000000e+00 : f32
    %116 = vector.broadcast %cst_44 : f32 to vector<8x32xf32>
    %117 = arith.subf %115, %116 : vector<8x32xf32>
    %118 = vector.extract_strided_slice %110 {offsets = [0, 96], sizes = [8, 32], strides = [1, 1]} : vector<8x128xf32> to vector<8x32xf32>
    %119 = arith.mulf %112, %77 : vector<8x32xf32>
    %120 = arith.mulf %111, %117 : vector<8x32xf32>
    %121 = arith.addf %119, %120 : vector<8x32xf32>
    %122 = math.tanh %121 : vector<8x32xf32>
    %123 = arith.mulf %118, %122 : vector<8x32xf32>
    %cst_45 = arith.constant dense<0.000000e+00> : vector<8x128xf32>
    %124 = tpu.matmul %123, %9, %cst_45 {dimension_numbers = #tpu.dot_dimension_numbers<[1], [0], [0], [1], [0, 0, 1, 1], [], []>} : vector<8x32xf32>, vector<32x128xf32>, vector<8x128xf32> -> vector<8x128xf32>
    %125 = vector.broadcast %10 : vector<1x128xf32> to vector<8x128xf32>
    %126 = arith.addf %124, %125 : vector<8x128xf32>
    %cst_46 = arith.constant dense<0.000000e+00> : vector<8x128xf32>
    %127 = tpu.matmul %102, %8, %cst_46 {dimension_numbers = #tpu.dot_dimension_numbers<[1], [0], [0], [1], [0, 0, 1, 1], [], []>} : vector<8x32xf32>, vector<32x128xf32>, vector<8x128xf32> -> vector<8x128xf32>
    %128 = arith.addf %126, %127 : vector<8x128xf32>
    %129 = arith.negf %128 : vector<8x128xf32>
    %130 = math.exp %129 : vector<8x128xf32>
    %cst_47 = arith.constant 1.000000e+00 : f32
    %131 = vector.broadcast %cst_47 : f32 to vector<8x128xf32>
    %132 = arith.addf %131, %130 : vector<8x128xf32>
    %133 = arith.divf %131, %132 : vector<8x128xf32>
    %134 = vector.extract_strided_slice %133 {offsets = [0, 0], sizes = [8, 32], strides = [1, 1]} : vector<8x128xf32> to vector<8x32xf32>
    %135 = vector.extract_strided_slice %133 {offsets = [0, 32], sizes = [8, 32], strides = [1, 1]} : vector<8x128xf32> to vector<8x32xf32>
    %136 = vector.extract_strided_slice %133 {offsets = [0, 64], sizes = [8, 32], strides = [1, 1]} : vector<8x128xf32> to vector<8x32xf32>
    %cst_48 = arith.constant 2.000000e+00 : f32
    %137 = vector.broadcast %cst_48 : f32 to vector<8x32xf32>
    %138 = arith.mulf %137, %136 : vector<8x32xf32>
    %cst_49 = arith.constant 1.000000e+00 : f32
    %139 = vector.broadcast %cst_49 : f32 to vector<8x32xf32>
    %140 = arith.subf %138, %139 : vector<8x32xf32>
    %141 = vector.extract_strided_slice %133 {offsets = [0, 96], sizes = [8, 32], strides = [1, 1]} : vector<8x128xf32> to vector<8x32xf32>
    %142 = arith.mulf %135, %100 : vector<8x32xf32>
    %143 = arith.mulf %134, %140 : vector<8x32xf32>
    %144 = arith.addf %142, %143 : vector<8x32xf32>
    %145 = math.tanh %144 : vector<8x32xf32>
    %146 = arith.mulf %141, %145 : vector<8x32xf32>
    %c24 = arith.constant 24 : index
    %c0_50 = arith.constant 0 : index
    %147 = vector.load %arg14[%c24, %c0_50] : memref<64x128xf32, #tpu.memory_space<vmem>>, vector<8x128xf32>
    %cst_51 = arith.constant dense<0.000000e+00> : vector<8x128xf32>
    %148 = tpu.matmul %123, %7, %cst_51 {dimension_numbers = #tpu.dot_dimension_numbers<[1], [0], [0], [1], [0, 0, 1, 1], [], []>} : vector<8x32xf32>, vector<32x128xf32>, vector<8x128xf32> -> vector<8x128xf32>
    %149 = arith.addf %147, %148 : vector<8x128xf32>
    %150 = arith.negf %149 : vector<8x128xf32>
    %151 = math.exp %150 : vector<8x128xf32>
    %cst_52 = arith.constant 1.000000e+00 : f32
    %152 = vector.broadcast %cst_52 : f32 to vector<8x128xf32>
    %153 = arith.addf %152, %151 : vector<8x128xf32>
    %154 = arith.divf %152, %153 : vector<8x128xf32>
    %155 = vector.extract_strided_slice %154 {offsets = [0, 0], sizes = [8, 32], strides = [1, 1]} : vector<8x128xf32> to vector<8x32xf32>
    %156 = vector.extract_strided_slice %154 {offsets = [0, 32], sizes = [8, 32], strides = [1, 1]} : vector<8x128xf32> to vector<8x32xf32>
    %157 = vector.extract_strided_slice %154 {offsets = [0, 64], sizes = [8, 32], strides = [1, 1]} : vector<8x128xf32> to vector<8x32xf32>
    %cst_53 = arith.constant 2.000000e+00 : f32
    %158 = vector.broadcast %cst_53 : f32 to vector<8x32xf32>
    %159 = arith.mulf %158, %157 : vector<8x32xf32>
    %cst_54 = arith.constant 1.000000e+00 : f32
    %160 = vector.broadcast %cst_54 : f32 to vector<8x32xf32>
    %161 = arith.subf %159, %160 : vector<8x32xf32>
    %162 = vector.extract_strided_slice %154 {offsets = [0, 96], sizes = [8, 32], strides = [1, 1]} : vector<8x128xf32> to vector<8x32xf32>
    %163 = arith.mulf %156, %121 : vector<8x32xf32>
    %164 = arith.mulf %155, %161 : vector<8x32xf32>
    %165 = arith.addf %163, %164 : vector<8x32xf32>
    %166 = math.tanh %165 : vector<8x32xf32>
    %167 = arith.mulf %162, %166 : vector<8x32xf32>
    %cst_55 = arith.constant dense<0.000000e+00> : vector<8x128xf32>
    %168 = tpu.matmul %167, %9, %cst_55 {dimension_numbers = #tpu.dot_dimension_numbers<[1], [0], [0], [1], [0, 0, 1, 1], [], []>} : vector<8x32xf32>, vector<32x128xf32>, vector<8x128xf32> -> vector<8x128xf32>
    %169 = vector.broadcast %10 : vector<1x128xf32> to vector<8x128xf32>
    %170 = arith.addf %168, %169 : vector<8x128xf32>
    %cst_56 = arith.constant dense<0.000000e+00> : vector<8x128xf32>
    %171 = tpu.matmul %146, %8, %cst_56 {dimension_numbers = #tpu.dot_dimension_numbers<[1], [0], [0], [1], [0, 0, 1, 1], [], []>} : vector<8x32xf32>, vector<32x128xf32>, vector<8x128xf32> -> vector<8x128xf32>
    %172 = arith.addf %170, %171 : vector<8x128xf32>
    %173 = arith.negf %172 : vector<8x128xf32>
    %174 = math.exp %173 : vector<8x128xf32>
    %cst_57 = arith.constant 1.000000e+00 : f32
    %175 = vector.broadcast %cst_57 : f32 to vector<8x128xf32>
    %176 = arith.addf %175, %174 : vector<8x128xf32>
    %177 = arith.divf %175, %176 : vector<8x128xf32>
    %178 = vector.extract_strided_slice %177 {offsets = [0, 0], sizes = [8, 32], strides = [1, 1]} : vector<8x128xf32> to vector<8x32xf32>
    %179 = vector.extract_strided_slice %177 {offsets = [0, 32], sizes = [8, 32], strides = [1, 1]} : vector<8x128xf32> to vector<8x32xf32>
    %180 = vector.extract_strided_slice %177 {offsets = [0, 64], sizes = [8, 32], strides = [1, 1]} : vector<8x128xf32> to vector<8x32xf32>
    %cst_58 = arith.constant 2.000000e+00 : f32
    %181 = vector.broadcast %cst_58 : f32 to vector<8x32xf32>
    %182 = arith.mulf %181, %180 : vector<8x32xf32>
    %cst_59 = arith.constant 1.000000e+00 : f32
    %183 = vector.broadcast %cst_59 : f32 to vector<8x32xf32>
    %184 = arith.subf %182, %183 : vector<8x32xf32>
    %185 = vector.extract_strided_slice %177 {offsets = [0, 96], sizes = [8, 32], strides = [1, 1]} : vector<8x128xf32> to vector<8x32xf32>
    %186 = arith.mulf %179, %144 : vector<8x32xf32>
    %187 = arith.mulf %178, %184 : vector<8x32xf32>
    %188 = arith.addf %186, %187 : vector<8x32xf32>
    %189 = math.tanh %188 : vector<8x32xf32>
    %190 = arith.mulf %185, %189 : vector<8x32xf32>
    %c32 = arith.constant 32 : index
    %c0_60 = arith.constant 0 : index
    %191 = vector.load %arg14[%c32, %c0_60] : memref<64x128xf32, #tpu.memory_space<vmem>>, vector<8x128xf32>
    %cst_61 = arith.constant dense<0.000000e+00> : vector<8x128xf32>
    %192 = tpu.matmul %167, %7, %cst_61 {dimension_numbers = #tpu.dot_dimension_numbers<[1], [0], [0], [1], [0, 0, 1, 1], [], []>} : vector<8x32xf32>, vector<32x128xf32>, vector<8x128xf32> -> vector<8x128xf32>
    %193 = arith.addf %191, %192 : vector<8x128xf32>
    %194 = arith.negf %193 : vector<8x128xf32>
    %195 = math.exp %194 : vector<8x128xf32>
    %cst_62 = arith.constant 1.000000e+00 : f32
    %196 = vector.broadcast %cst_62 : f32 to vector<8x128xf32>
    %197 = arith.addf %196, %195 : vector<8x128xf32>
    %198 = arith.divf %196, %197 : vector<8x128xf32>
    %199 = vector.extract_strided_slice %198 {offsets = [0, 0], sizes = [8, 32], strides = [1, 1]} : vector<8x128xf32> to vector<8x32xf32>
    %200 = vector.extract_strided_slice %198 {offsets = [0, 32], sizes = [8, 32], strides = [1, 1]} : vector<8x128xf32> to vector<8x32xf32>
    %201 = vector.extract_strided_slice %198 {offsets = [0, 64], sizes = [8, 32], strides = [1, 1]} : vector<8x128xf32> to vector<8x32xf32>
    %cst_63 = arith.constant 2.000000e+00 : f32
    %202 = vector.broadcast %cst_63 : f32 to vector<8x32xf32>
    %203 = arith.mulf %202, %201 : vector<8x32xf32>
    %cst_64 = arith.constant 1.000000e+00 : f32
    %204 = vector.broadcast %cst_64 : f32 to vector<8x32xf32>
    %205 = arith.subf %203, %204 : vector<8x32xf32>
    %206 = vector.extract_strided_slice %198 {offsets = [0, 96], sizes = [8, 32], strides = [1, 1]} : vector<8x128xf32> to vector<8x32xf32>
    %207 = arith.mulf %200, %165 : vector<8x32xf32>
    %208 = arith.mulf %199, %205 : vector<8x32xf32>
    %209 = arith.addf %207, %208 : vector<8x32xf32>
    %210 = math.tanh %209 : vector<8x32xf32>
    %211 = arith.mulf %206, %210 : vector<8x32xf32>
    %cst_65 = arith.constant dense<0.000000e+00> : vector<8x128xf32>
    %212 = tpu.matmul %211, %9, %cst_65 {dimension_numbers = #tpu.dot_dimension_numbers<[1], [0], [0], [1], [0, 0, 1, 1], [], []>} : vector<8x32xf32>, vector<32x128xf32>, vector<8x128xf32> -> vector<8x128xf32>
    %213 = vector.broadcast %10 : vector<1x128xf32> to vector<8x128xf32>
    %214 = arith.addf %212, %213 : vector<8x128xf32>
    %cst_66 = arith.constant dense<0.000000e+00> : vector<8x128xf32>
    %215 = tpu.matmul %190, %8, %cst_66 {dimension_numbers = #tpu.dot_dimension_numbers<[1], [0], [0], [1], [0, 0, 1, 1], [], []>} : vector<8x32xf32>, vector<32x128xf32>, vector<8x128xf32> -> vector<8x128xf32>
    %216 = arith.addf %214, %215 : vector<8x128xf32>
    %217 = arith.negf %216 : vector<8x128xf32>
    %218 = math.exp %217 : vector<8x128xf32>
    %cst_67 = arith.constant 1.000000e+00 : f32
    %219 = vector.broadcast %cst_67 : f32 to vector<8x128xf32>
    %220 = arith.addf %219, %218 : vector<8x128xf32>
    %221 = arith.divf %219, %220 : vector<8x128xf32>
    %222 = vector.extract_strided_slice %221 {offsets = [0, 0], sizes = [8, 32], strides = [1, 1]} : vector<8x128xf32> to vector<8x32xf32>
    %223 = vector.extract_strided_slice %221 {offsets = [0, 32], sizes = [8, 32], strides = [1, 1]} : vector<8x128xf32> to vector<8x32xf32>
    %224 = vector.extract_strided_slice %221 {offsets = [0, 64], sizes = [8, 32], strides = [1, 1]} : vector<8x128xf32> to vector<8x32xf32>
    %cst_68 = arith.constant 2.000000e+00 : f32
    %225 = vector.broadcast %cst_68 : f32 to vector<8x32xf32>
    %226 = arith.mulf %225, %224 : vector<8x32xf32>
    %cst_69 = arith.constant 1.000000e+00 : f32
    %227 = vector.broadcast %cst_69 : f32 to vector<8x32xf32>
    %228 = arith.subf %226, %227 : vector<8x32xf32>
    %229 = vector.extract_strided_slice %221 {offsets = [0, 96], sizes = [8, 32], strides = [1, 1]} : vector<8x128xf32> to vector<8x32xf32>
    %230 = arith.mulf %223, %188 : vector<8x32xf32>
    %231 = arith.mulf %222, %228 : vector<8x32xf32>
    %232 = arith.addf %230, %231 : vector<8x32xf32>
    %233 = math.tanh %232 : vector<8x32xf32>
    %234 = arith.mulf %229, %233 : vector<8x32xf32>
    %c40 = arith.constant 40 : index
    %c0_70 = arith.constant 0 : index
    %235 = vector.load %arg14[%c40, %c0_70] : memref<64x128xf32, #tpu.memory_space<vmem>>, vector<8x128xf32>
    %cst_71 = arith.constant dense<0.000000e+00> : vector<8x128xf32>
    %236 = tpu.matmul %211, %7, %cst_71 {dimension_numbers = #tpu.dot_dimension_numbers<[1], [0], [0], [1], [0, 0, 1, 1], [], []>} : vector<8x32xf32>, vector<32x128xf32>, vector<8x128xf32> -> vector<8x128xf32>
    %237 = arith.addf %235, %236 : vector<8x128xf32>
    %238 = arith.negf %237 : vector<8x128xf32>
    %239 = math.exp %238 : vector<8x128xf32>
    %cst_72 = arith.constant 1.000000e+00 : f32
    %240 = vector.broadcast %cst_72 : f32 to vector<8x128xf32>
    %241 = arith.addf %240, %239 : vector<8x128xf32>
    %242 = arith.divf %240, %241 : vector<8x128xf32>
    %243 = vector.extract_strided_slice %242 {offsets = [0, 0], sizes = [8, 32], strides = [1, 1]} : vector<8x128xf32> to vector<8x32xf32>
    %244 = vector.extract_strided_slice %242 {offsets = [0, 32], sizes = [8, 32], strides = [1, 1]} : vector<8x128xf32> to vector<8x32xf32>
    %245 = vector.extract_strided_slice %242 {offsets = [0, 64], sizes = [8, 32], strides = [1, 1]} : vector<8x128xf32> to vector<8x32xf32>
    %cst_73 = arith.constant 2.000000e+00 : f32
    %246 = vector.broadcast %cst_73 : f32 to vector<8x32xf32>
    %247 = arith.mulf %246, %245 : vector<8x32xf32>
    %cst_74 = arith.constant 1.000000e+00 : f32
    %248 = vector.broadcast %cst_74 : f32 to vector<8x32xf32>
    %249 = arith.subf %247, %248 : vector<8x32xf32>
    %250 = vector.extract_strided_slice %242 {offsets = [0, 96], sizes = [8, 32], strides = [1, 1]} : vector<8x128xf32> to vector<8x32xf32>
    %251 = arith.mulf %244, %209 : vector<8x32xf32>
    %252 = arith.mulf %243, %249 : vector<8x32xf32>
    %253 = arith.addf %251, %252 : vector<8x32xf32>
    %254 = math.tanh %253 : vector<8x32xf32>
    %255 = arith.mulf %250, %254 : vector<8x32xf32>
    %cst_75 = arith.constant dense<0.000000e+00> : vector<8x128xf32>
    %256 = tpu.matmul %255, %9, %cst_75 {dimension_numbers = #tpu.dot_dimension_numbers<[1], [0], [0], [1], [0, 0, 1, 1], [], []>} : vector<8x32xf32>, vector<32x128xf32>, vector<8x128xf32> -> vector<8x128xf32>
    %257 = vector.broadcast %10 : vector<1x128xf32> to vector<8x128xf32>
    %258 = arith.addf %256, %257 : vector<8x128xf32>
    %cst_76 = arith.constant dense<0.000000e+00> : vector<8x128xf32>
    %259 = tpu.matmul %234, %8, %cst_76 {dimension_numbers = #tpu.dot_dimension_numbers<[1], [0], [0], [1], [0, 0, 1, 1], [], []>} : vector<8x32xf32>, vector<32x128xf32>, vector<8x128xf32> -> vector<8x128xf32>
    %260 = arith.addf %258, %259 : vector<8x128xf32>
    %261 = arith.negf %260 : vector<8x128xf32>
    %262 = math.exp %261 : vector<8x128xf32>
    %cst_77 = arith.constant 1.000000e+00 : f32
    %263 = vector.broadcast %cst_77 : f32 to vector<8x128xf32>
    %264 = arith.addf %263, %262 : vector<8x128xf32>
    %265 = arith.divf %263, %264 : vector<8x128xf32>
    %266 = vector.extract_strided_slice %265 {offsets = [0, 0], sizes = [8, 32], strides = [1, 1]} : vector<8x128xf32> to vector<8x32xf32>
    %267 = vector.extract_strided_slice %265 {offsets = [0, 32], sizes = [8, 32], strides = [1, 1]} : vector<8x128xf32> to vector<8x32xf32>
    %268 = vector.extract_strided_slice %265 {offsets = [0, 64], sizes = [8, 32], strides = [1, 1]} : vector<8x128xf32> to vector<8x32xf32>
    %cst_78 = arith.constant 2.000000e+00 : f32
    %269 = vector.broadcast %cst_78 : f32 to vector<8x32xf32>
    %270 = arith.mulf %269, %268 : vector<8x32xf32>
    %cst_79 = arith.constant 1.000000e+00 : f32
    %271 = vector.broadcast %cst_79 : f32 to vector<8x32xf32>
    %272 = arith.subf %270, %271 : vector<8x32xf32>
    %273 = vector.extract_strided_slice %265 {offsets = [0, 96], sizes = [8, 32], strides = [1, 1]} : vector<8x128xf32> to vector<8x32xf32>
    %274 = arith.mulf %267, %232 : vector<8x32xf32>
    %275 = arith.mulf %266, %272 : vector<8x32xf32>
    %276 = arith.addf %274, %275 : vector<8x32xf32>
    %277 = math.tanh %276 : vector<8x32xf32>
    %278 = arith.mulf %273, %277 : vector<8x32xf32>
    %c48 = arith.constant 48 : index
    %c0_80 = arith.constant 0 : index
    %279 = vector.load %arg14[%c48, %c0_80] : memref<64x128xf32, #tpu.memory_space<vmem>>, vector<8x128xf32>
    %cst_81 = arith.constant dense<0.000000e+00> : vector<8x128xf32>
    %280 = tpu.matmul %255, %7, %cst_81 {dimension_numbers = #tpu.dot_dimension_numbers<[1], [0], [0], [1], [0, 0, 1, 1], [], []>} : vector<8x32xf32>, vector<32x128xf32>, vector<8x128xf32> -> vector<8x128xf32>
    %281 = arith.addf %279, %280 : vector<8x128xf32>
    %282 = arith.negf %281 : vector<8x128xf32>
    %283 = math.exp %282 : vector<8x128xf32>
    %cst_82 = arith.constant 1.000000e+00 : f32
    %284 = vector.broadcast %cst_82 : f32 to vector<8x128xf32>
    %285 = arith.addf %284, %283 : vector<8x128xf32>
    %286 = arith.divf %284, %285 : vector<8x128xf32>
    %287 = vector.extract_strided_slice %286 {offsets = [0, 0], sizes = [8, 32], strides = [1, 1]} : vector<8x128xf32> to vector<8x32xf32>
    %288 = vector.extract_strided_slice %286 {offsets = [0, 32], sizes = [8, 32], strides = [1, 1]} : vector<8x128xf32> to vector<8x32xf32>
    %289 = vector.extract_strided_slice %286 {offsets = [0, 64], sizes = [8, 32], strides = [1, 1]} : vector<8x128xf32> to vector<8x32xf32>
    %cst_83 = arith.constant 2.000000e+00 : f32
    %290 = vector.broadcast %cst_83 : f32 to vector<8x32xf32>
    %291 = arith.mulf %290, %289 : vector<8x32xf32>
    %cst_84 = arith.constant 1.000000e+00 : f32
    %292 = vector.broadcast %cst_84 : f32 to vector<8x32xf32>
    %293 = arith.subf %291, %292 : vector<8x32xf32>
    %294 = vector.extract_strided_slice %286 {offsets = [0, 96], sizes = [8, 32], strides = [1, 1]} : vector<8x128xf32> to vector<8x32xf32>
    %295 = arith.mulf %288, %253 : vector<8x32xf32>
    %296 = arith.mulf %287, %293 : vector<8x32xf32>
    %297 = arith.addf %295, %296 : vector<8x32xf32>
    %298 = math.tanh %297 : vector<8x32xf32>
    %299 = arith.mulf %294, %298 : vector<8x32xf32>
    %cst_85 = arith.constant dense<0.000000e+00> : vector<8x128xf32>
    %300 = tpu.matmul %299, %9, %cst_85 {dimension_numbers = #tpu.dot_dimension_numbers<[1], [0], [0], [1], [0, 0, 1, 1], [], []>} : vector<8x32xf32>, vector<32x128xf32>, vector<8x128xf32> -> vector<8x128xf32>
    %301 = vector.broadcast %10 : vector<1x128xf32> to vector<8x128xf32>
    %302 = arith.addf %300, %301 : vector<8x128xf32>
    %cst_86 = arith.constant dense<0.000000e+00> : vector<8x128xf32>
    %303 = tpu.matmul %278, %8, %cst_86 {dimension_numbers = #tpu.dot_dimension_numbers<[1], [0], [0], [1], [0, 0, 1, 1], [], []>} : vector<8x32xf32>, vector<32x128xf32>, vector<8x128xf32> -> vector<8x128xf32>
    %304 = arith.addf %302, %303 : vector<8x128xf32>
    %305 = arith.negf %304 : vector<8x128xf32>
    %306 = math.exp %305 : vector<8x128xf32>
    %cst_87 = arith.constant 1.000000e+00 : f32
    %307 = vector.broadcast %cst_87 : f32 to vector<8x128xf32>
    %308 = arith.addf %307, %306 : vector<8x128xf32>
    %309 = arith.divf %307, %308 : vector<8x128xf32>
    %310 = vector.extract_strided_slice %309 {offsets = [0, 0], sizes = [8, 32], strides = [1, 1]} : vector<8x128xf32> to vector<8x32xf32>
    %311 = vector.extract_strided_slice %309 {offsets = [0, 32], sizes = [8, 32], strides = [1, 1]} : vector<8x128xf32> to vector<8x32xf32>
    %312 = vector.extract_strided_slice %309 {offsets = [0, 64], sizes = [8, 32], strides = [1, 1]} : vector<8x128xf32> to vector<8x32xf32>
    %cst_88 = arith.constant 2.000000e+00 : f32
    %313 = vector.broadcast %cst_88 : f32 to vector<8x32xf32>
    %314 = arith.mulf %313, %312 : vector<8x32xf32>
    %cst_89 = arith.constant 1.000000e+00 : f32
    %315 = vector.broadcast %cst_89 : f32 to vector<8x32xf32>
    %316 = arith.subf %314, %315 : vector<8x32xf32>
    %317 = vector.extract_strided_slice %309 {offsets = [0, 96], sizes = [8, 32], strides = [1, 1]} : vector<8x128xf32> to vector<8x32xf32>
    %318 = arith.mulf %311, %276 : vector<8x32xf32>
    %319 = arith.mulf %310, %316 : vector<8x32xf32>
    %320 = arith.addf %318, %319 : vector<8x32xf32>
    %321 = math.tanh %320 : vector<8x32xf32>
    %322 = arith.mulf %317, %321 : vector<8x32xf32>
    %c56 = arith.constant 56 : index
    %c0_90 = arith.constant 0 : index
    %323 = vector.load %arg14[%c56, %c0_90] : memref<64x128xf32, #tpu.memory_space<vmem>>, vector<8x128xf32>
    %cst_91 = arith.constant dense<0.000000e+00> : vector<8x128xf32>
    %324 = tpu.matmul %299, %7, %cst_91 {dimension_numbers = #tpu.dot_dimension_numbers<[1], [0], [0], [1], [0, 0, 1, 1], [], []>} : vector<8x32xf32>, vector<32x128xf32>, vector<8x128xf32> -> vector<8x128xf32>
    %325 = arith.addf %323, %324 : vector<8x128xf32>
    %326 = arith.negf %325 : vector<8x128xf32>
    %327 = math.exp %326 : vector<8x128xf32>
    %cst_92 = arith.constant 1.000000e+00 : f32
    %328 = vector.broadcast %cst_92 : f32 to vector<8x128xf32>
    %329 = arith.addf %328, %327 : vector<8x128xf32>
    %330 = arith.divf %328, %329 : vector<8x128xf32>
    %331 = vector.extract_strided_slice %330 {offsets = [0, 0], sizes = [8, 32], strides = [1, 1]} : vector<8x128xf32> to vector<8x32xf32>
    %332 = vector.extract_strided_slice %330 {offsets = [0, 32], sizes = [8, 32], strides = [1, 1]} : vector<8x128xf32> to vector<8x32xf32>
    %333 = vector.extract_strided_slice %330 {offsets = [0, 64], sizes = [8, 32], strides = [1, 1]} : vector<8x128xf32> to vector<8x32xf32>
    %cst_93 = arith.constant 2.000000e+00 : f32
    %334 = vector.broadcast %cst_93 : f32 to vector<8x32xf32>
    %335 = arith.mulf %334, %333 : vector<8x32xf32>
    %cst_94 = arith.constant 1.000000e+00 : f32
    %336 = vector.broadcast %cst_94 : f32 to vector<8x32xf32>
    %337 = arith.subf %335, %336 : vector<8x32xf32>
    %338 = vector.extract_strided_slice %330 {offsets = [0, 96], sizes = [8, 32], strides = [1, 1]} : vector<8x128xf32> to vector<8x32xf32>
    %339 = arith.mulf %332, %297 : vector<8x32xf32>
    %340 = arith.mulf %331, %337 : vector<8x32xf32>
    %341 = arith.addf %339, %340 : vector<8x32xf32>
    %342 = math.tanh %341 : vector<8x32xf32>
    %343 = arith.mulf %338, %342 : vector<8x32xf32>
    %cst_95 = arith.constant dense<0.000000e+00> : vector<8x128xf32>
    %344 = tpu.matmul %343, %9, %cst_95 {dimension_numbers = #tpu.dot_dimension_numbers<[1], [0], [0], [1], [0, 0, 1, 1], [], []>} : vector<8x32xf32>, vector<32x128xf32>, vector<8x128xf32> -> vector<8x128xf32>
    %345 = vector.broadcast %10 : vector<1x128xf32> to vector<8x128xf32>
    %346 = arith.addf %344, %345 : vector<8x128xf32>
    %cst_96 = arith.constant dense<0.000000e+00> : vector<8x128xf32>
    %347 = tpu.matmul %322, %8, %cst_96 {dimension_numbers = #tpu.dot_dimension_numbers<[1], [0], [0], [1], [0, 0, 1, 1], [], []>} : vector<8x32xf32>, vector<32x128xf32>, vector<8x128xf32> -> vector<8x128xf32>
    %348 = arith.addf %346, %347 : vector<8x128xf32>
    %349 = arith.negf %348 : vector<8x128xf32>
    %350 = math.exp %349 : vector<8x128xf32>
    %cst_97 = arith.constant 1.000000e+00 : f32
    %351 = vector.broadcast %cst_97 : f32 to vector<8x128xf32>
    %352 = arith.addf %351, %350 : vector<8x128xf32>
    %353 = arith.divf %351, %352 : vector<8x128xf32>
    %354 = vector.extract_strided_slice %353 {offsets = [0, 0], sizes = [8, 32], strides = [1, 1]} : vector<8x128xf32> to vector<8x32xf32>
    %355 = vector.extract_strided_slice %353 {offsets = [0, 32], sizes = [8, 32], strides = [1, 1]} : vector<8x128xf32> to vector<8x32xf32>
    %356 = vector.extract_strided_slice %353 {offsets = [0, 64], sizes = [8, 32], strides = [1, 1]} : vector<8x128xf32> to vector<8x32xf32>
    %cst_98 = arith.constant 2.000000e+00 : f32
    %357 = vector.broadcast %cst_98 : f32 to vector<8x32xf32>
    %358 = arith.mulf %357, %356 : vector<8x32xf32>
    %cst_99 = arith.constant 1.000000e+00 : f32
    %359 = vector.broadcast %cst_99 : f32 to vector<8x32xf32>
    %360 = arith.subf %358, %359 : vector<8x32xf32>
    %361 = vector.extract_strided_slice %353 {offsets = [0, 96], sizes = [8, 32], strides = [1, 1]} : vector<8x128xf32> to vector<8x32xf32>
    %362 = arith.mulf %355, %320 : vector<8x32xf32>
    %363 = arith.mulf %354, %360 : vector<8x32xf32>
    %364 = arith.addf %362, %363 : vector<8x32xf32>
    %365 = math.tanh %364 : vector<8x32xf32>
    %366 = arith.mulf %361, %365 : vector<8x32xf32>
    %c0_100 = arith.constant 0 : index
    %c0_101 = arith.constant 0 : index
    %367 = vector.load %arg7[%c0_100, %c0_101] : memref<32x256xf32, #tpu.memory_space<vmem>>, vector<32x256xf32>
    %cst_102 = arith.constant dense<0.000000e+00> : vector<8x256xf32>
    %368 = tpu.matmul %366, %367, %cst_102 {dimension_numbers = #tpu.dot_dimension_numbers<[1], [0], [0], [1], [0, 0, 1, 1], [], []>} : vector<8x32xf32>, vector<32x256xf32>, vector<8x256xf32> -> vector<8x256xf32>
    %c0_103 = arith.constant 0 : index
    %c0_104 = arith.constant 0 : index
    %369 = vector.load %arg8[%c0_103, %c0_104] : memref<1x256xf32, #tpu.memory_space<vmem>>, vector<1x256xf32>
    %370 = vector.broadcast %369 : vector<1x256xf32> to vector<8x256xf32>
    %371 = arith.addf %368, %370 : vector<8x256xf32>
    %cst_105 = arith.constant 0.000000e+00 : f32
    %372 = vector.broadcast %cst_105 : f32 to vector<8x256xf32>
    %373 = arith.maximumf %371, %372 : vector<8x256xf32>
    %c0_106 = arith.constant 0 : index
    %c0_107 = arith.constant 0 : index
    %374 = vector.load %arg9[%c0_106, %c0_107] : memref<256x128xf32, #tpu.memory_space<vmem>>, vector<256x128xf32>
    %cst_108 = arith.constant dense<0.000000e+00> : vector<8x128xf32>
    %375 = tpu.matmul %373, %374, %cst_108 {dimension_numbers = #tpu.dot_dimension_numbers<[1], [0], [0], [1], [0, 0, 1, 1], [], []>} : vector<8x256xf32>, vector<256x128xf32>, vector<8x128xf32> -> vector<8x128xf32>
    %c0_109 = arith.constant 0 : index
    %c0_110 = arith.constant 0 : index
    %376 = vector.load %arg10[%c0_109, %c0_110] : memref<1x128xf32, #tpu.memory_space<vmem>>, vector<1x128xf32>
    %377 = vector.broadcast %376 : vector<1x128xf32> to vector<8x128xf32>
    %378 = arith.addf %375, %377 : vector<8x128xf32>
    %cst_111 = arith.constant 0.000000e+00 : f32
    %379 = vector.broadcast %cst_111 : f32 to vector<8x128xf32>
    %380 = arith.maximumf %378, %379 : vector<8x128xf32>
    %c0_112 = arith.constant 0 : index
    %c0_113 = arith.constant 0 : index
    %381 = vector.load %arg11[%c0_112, %c0_113] : memref<128x128xf32, #tpu.memory_space<vmem>>, vector<128x128xf32>
    %cst_114 = arith.constant dense<0.000000e+00> : vector<8x128xf32>
    %382 = tpu.matmul %380, %381, %cst_114 {dimension_numbers = #tpu.dot_dimension_numbers<[1], [0], [0], [1], [0, 0, 1, 1], [], []>} : vector<8x128xf32>, vector<128x128xf32>, vector<8x128xf32> -> vector<8x128xf32>
    %c0_115 = arith.constant 0 : index
    %c0_116 = arith.constant 0 : index
    %383 = vector.load %arg12[%c0_115, %c0_116] : memref<1x128xf32, #tpu.memory_space<vmem>>, vector<1x128xf32>
    %384 = vector.broadcast %383 : vector<1x128xf32> to vector<8x128xf32>
    %385 = arith.addf %382, %384 : vector<8x128xf32>
    %cst_117 = arith.constant dense<0xFF800000> : vector<8xf32>
    %386 = vector.multi_reduction <maximumf>, %385, %cst_117 [1] : vector<8x128xf32> to vector<8xf32>
    %387 = vector.shape_cast %386 : vector<8xf32> to vector<8x1xf32>
    %388 = vector.broadcast %387 : vector<8x1xf32> to vector<8x128xf32>
    %389 = arith.subf %385, %388 : vector<8x128xf32>
    %390 = math.exp %389 : vector<8x128xf32>
    %cst_118 = arith.constant dense<0.000000e+00> : vector<8xf32>
    %391 = vector.multi_reduction <add>, %390, %cst_118 [1] : vector<8x128xf32> to vector<8xf32>
    %392 = vector.shape_cast %391 : vector<8xf32> to vector<8x1xf32>
    %393 = tpu.reciprocal %392 : vector<8x1xf32> -> vector<8x1xf32>
    %394 = vector.broadcast %393 : vector<8x1xf32> to vector<8x128xf32>
    %395 = arith.mulf %390, %394 : vector<8x128xf32>
    %c0_119 = arith.constant 0 : index
    %c0_120 = arith.constant 0 : index
    %396 = vector.load %arg13[%c0_119, %c0_120] : memref<8x128xf32, #tpu.memory_space<vmem>>, vector<8x128xf32>
    tpu.vector_store %arg13[%c0_119, %c0_120], %395 {strides = array<i32>} : memref<8x128xf32, #tpu.memory_space<vmem>>, vector<8x128xf32>,
    return
  }
}

</mosaic_0001>

<bundles_post_ra>
// kernel: lstm_model_forward.1
= control target key start
LH: loop header
LB: loop body
LE: loop exit
PB: predicated region body
PF: predicated region fallthrough
CT: control target
= control target key end

     0   :  { %vm85_vm0 = vcmask 1045504   ;;  %vm60_vm1 = vcmask 48128   ;;  %v3618_v0 = vmov 0.0|0.0   ;;  %vm3619_vm2 = vmmov 0   ;;  %s3621_s22 = smov 64   ;;  %s4293_s2 = inlined_call_operand.vmem [shape: f32[32,128], index: 2, kind: input, shape index: {}]   ;;  %s4294_s1 = inlined_call_operand.vmem [shape: f32[6,128], index: 1, kind: input, shape index: {}]   ;;  %s4295_s0 = inlined_call_operand.vmem [shape: f32[64,6], index: 0, kind: input, shape index: {}]   ;;  %s4296_s3 = inlined_call_operand.vmem [shape: f32[1,128], index: 3, kind: input, shape index: {}]   ;;  %s4297_s4 = inlined_call_operand.vmem [shape: f32[32,128], index: 4, kind: input, shape index: {}]   ;;  %s4298_s5 = inlined_call_operand.vmem [shape: f32[32,128], index: 5, kind: input, shape index: {}]   ;;  %s4299_s6 = inlined_call_operand.vmem [shape: f32[1,128], index: 6, kind: input, shape index: {}]   ;;  %s4300_s7 = inlined_call_operand.vmem [shape: f32[32,256], index: 7, kind: input, shape index: {}]   ;;  %s4301_s9 = inlined_call_operand.vmem [shape: f32[256,128], index: 9, kind: input, shape index: {}]   ;;  %s4302_s11 = inlined_call_operand.vmem [shape: f32[128,128], index: 11, kind: input, shape index: {}]   ;;  %s4303_s8 = inlined_call_operand.vmem [shape: f32[1,256], index: 8, kind: input, shape index: {}]   ;;  %s4304_s10 = inlined_call_operand.vmem [shape: f32[1,128], index: 10, kind: input, shape index: {}]   ;;  %s4305_s12 = inlined_call_operand.vmem [shape: f32[1,128], index: 12, kind: input, shape index: {}]   ;;  %s4306_s13 = inlined_call_operand.vmem [shape: f32[8,128], index: 13, kind: output, shape index: {}]  }
   0x1   :  { %3281 = vmatprep.subr.bf16.mxu1 %v3618_v0  ;;  %v202_v1 = vld [vmem:[%s4293_s2] sm:$0xff]  ;;  %v203_v2 = vld [vmem:[%s4293_s2 + $0x8] sm:$0xff]  ;;  %v204_v7 = vld [vmem:[%s4293_s2 + $0x10] sm:$0xff]  ;;  %v3620_v8 = vmov 0.0   ;;  %vm216_vm3 = vcmask 261120  }
   0x2   :  { %v52_v3 = vld [vmem:[%s4294_s1] sm:$0x3f]  ;;  %v3703_v4 = vpack.c.bf16 %v203_v2, %v202_v1  ;;  %v45_v6 = vld [vmem:[%s4295_s0 + $0x8] sm:$0xff]  ;;  %2990 = vmatprep.mubr.msk.f32.mxu1 %vm3619_vm2, %v3620_v8  ;;  %v205_v9 = vld [vmem:[%s4293_s2 + $0x18] sm:$0xff] }
   0x3   :  { %2968 = vmatprep.subr.msk.mxu0 %vm85_vm0, %v52_v3  ;;  %v44_v5 = vld [vmem:[%s4295_s0] sm:$0xff]  ;;  %v3724_v10 = vpack.c.bf16 %v205_v9, %v204_v7  ;;  %v46_v29 = vld [vmem:[%s4295_s0 + $0x10] sm:$0xff]  ;;  %v47_v30 = vld [vmem:[%s4295_s0 + $0x18] sm:$0xff] }
   0x4   :  { %2969 = vmatpush3.msk.msra.mxu0 %vm85_vm0, %v52_v3  ;;  %2970 = vmatprep.mubr.msk.f32.mxu0 %vm60_vm1, %v44_v5  ;;  %v3742_v12 = vld [vmem:[%s4296_s3] ss:$0 sm:$0xff]  ;;  %s3622_s3 = smov 32   ;;  %v211_v33 = vld [vmem:[%s4297_s4 + $0x8] sm:$0xff]  ;;  %v212_v35 = vld [vmem:[%s4297_s4 + $0x10] sm:$0xff] }
   0x5   :  { %3283 = vmatpush3.bf16.msra.mxu1 %v3703_v4  ;;  %2971 = vmatmul.mubr.msk.f32.vlgmr.msra.gmra.mrb[0].mxu0 %vm60_vm1, %v45_v6  ;;  %v48_v31 = vld [vmem:[%s4295_s0 + $0x20] sm:$0xff]  ;;  %v49_v36 = vld [vmem:[%s4295_s0 + $0x28] sm:$0xff]  ;;  %v213_v37 = vld [vmem:[%s4297_s4 + $0x18] sm:$0xff] }
   0x6   :  { %3284 = vmatprep.subr.bf16.mxu1 %v3618_v0  ;;  %3299 = vmatprep.subr.bf16.mxu0 %v3618_v0  ;;  %v210_v32 = vld [vmem:[%s4297_s4] sm:$0xff]  ;;  %v50_v38 = vld [vmem:[%s4295_s0 + $0x30] sm:$0xff]  ;;  %v3783_v39 = vpack.c.bf16 %v213_v37, %v212_v35  ;;  %v51_v40 = vld [vmem:[%s4295_s0 + $0x38] sm:$0xff] }
   0x7   :  { %3301 = vmatpush3.bf16.msra.mxu0 %v3703_v4  ;;  %2973 = vmatprep.mubr.msk.f32.mxu0 %vm60_vm1, %v46_v29  ;;  %v3767_v34 = vpack.c.bf16 %v211_v33, %v210_v32  ;;  %v206_v50 = vld [vmem:[%s4298_s5] sm:$0xff]  ;;  %v207_v51 = vld [vmem:[%s4298_s5 + $0x8] sm:$0xff]  ;;  %v208_v53 = vld [vmem:[%s4298_s5 + $0x10] sm:$0xff] }
   0x8   :  { %3302 = vmatprep.subr.bf16.mxu0 %v3618_v0  ;;  %v3816_v52 = vpack.c.bf16 %v207_v51, %v206_v50  ;;  %v209_v54 = vld [vmem:[%s4298_s5 + $0x18] sm:$0xff]  ;;  %v3852_v62 = vld [vmem:[%s4299_s6] ss:$0 sm:$0xff] }
   0x9   :  { %3286 = vmatpush3.bf16.msra.mxu1 %v3724_v10  ;;  %2974 = vmatmul.mubr.msk.f32.gmra.mrb[2].mxu0 %vm60_vm1, %v47_v30  ;;  %v3827_v56 = vpack.c.bf16 %v209_v54, %v208_v53 }
   0xa   :  { %3287 = vmatprep.subr.bf16.mxu1 %v3618_v0  ;;  %2976 = vmatprep.mubr.msk.f32.mxu0 %vm60_vm1, %v48_v31 }
   0xb   :  { %3304 = vmatpush3.bf16.msra.mxu0 %v3724_v10 }
   0xc   :  { %2991 = vmatmul.mubr.f32.vlgmr.msra.gmra.mrb[0].mxu1 %v3620_v8  ;;  %3305 = vmatprep.subr.bf16.mxu0 %v3618_v0 }
   0xd   :  { %3001 = vmatprep.mubr.msk.f32.mxu1 %vm3619_vm2, %v3620_v8  ;;  %3289 = vmatpush3.bf16.msra.mxu1 %v3767_v34 }
   0xe   :  { %3290 = vmatprep.subr.bf16.mxu1 %v3618_v0  ;;  %2977 = vmatmul.mubr.msk.f32.gmra.mrb[4].mxu0 %vm60_vm1, %v49_v36 }
   0xf   :  { %2979 = vmatprep.mubr.msk.f32.mxu0 %vm60_vm1, %v50_v38 }
  0x11   :  { %3292 = vmatpush3.bf16.msra.mxu1 %v3783_v39 }
  0x12   :  { %3293 = vmatprep.subr.bf16.mxu1 %v3618_v0  ;;  %2980 = vmatmul.mubr.msk.f32.gmra.mrb[6].mxu0 %vm60_vm1, %v51_v40 }
  0x13   :  { %3023 = vmatprep.mubr.msk.f32.mxu0 %vm3619_vm2, %v3620_v8 }
  0xd8   :  { %v3737_v11 = vpop.f32.mrb[0].mxu0 }
  0xd9   :  { %v155_v13 = vpop.f32.mrb[1].mxu0  ;;  %v161_v57 = vadd.f32 %v3737_v11, %v3742_v12 }
  0xda   :  { %v156_v14 = vadd.f32 %v3742_v12, %v155_v13 }
  0xdc   :  { %v3798_v44 = vpop.f32.mrb[2].mxu0 }
  0xdd   :  { %v3800_v45 = vpop.f32.mrb[3].mxu0 }
  0xde   :  { %v166_v37 = vadd.f32 %v3742_v12, %v3800_v45 }
  0xdf   :  { %v286_v15 = vpop.f32.mrb[0].mxu1 }
  0xe0   :  { %v290_v16 = vadd.f32 %v286_v15, %v156_v14  ;;  %v2992_v17 = vpop.f32.mrb[1].mxu1 }
  0xe1   :  { %v3802_v46 = vpop.f32.mrb[4].mxu0 }
  0xe2   :  { %v2729_v18 = vmul.f32 -1.442695, %v290_v16  ;;  %v3804_v47 = vpop.f32.mrb[5].mxu0 }
  0xe4   :  { %3518 = vpow2.f32 %v2729_v18 }
  0xe5   :  { %v3806_v48 = vpop.f32.mrb[6].mxu0 }
  0xe6   :  { %v3808_v49 = vpop.f32.mrb[7].mxu0 }
  0xee   :  { %v3519_v19 = vpop.eup %3518 }
  0xef   :  { %v294_v20 = vadd.f32 1.0, %v3519_v19 }
  0xf1   :  { %3520 = vrcp.f32 %v294_v20 }
  0xfb   :  { %v3521_v21 = vpop.eup %3520 }
  0xfc   :  { %v297_v22 = vmul.f32 2.0, %v3521_v21  ;;  %v299_v26 = vmul.f32 0.0, %v3521_v21 }
  0xfe   :  { %v2730_v23 = vadd.f32 -1.0, %v297_v22 }
 0x100   :  { %301 = vrot.lane.b32.xlu0 %v2730_v23, %s3621_s22 }
 0x172   :  { %v302_v24 = vpop.permute.xlu0 %301 }
 0x173   :  { %v304_v25 = vmul.f32 %v3521_v21, %v302_v24 }
 0x175   :  { %306 = vrot.lane.b32.xlu0 %v304_v25, %s3622_s3 }
 0x1e7   :  { %v307_v27 = vpop.permute.xlu0 %306 }
 0x1e8   :  { %v3747_v28 = vadd.f32 %v307_v27, %v299_v26 }
 0x1ea   :  { %3522 = vtanh.f32 %v3747_v28 }
 0x1f4   :  { %v3523_v41 = vpop.eup %3522 }
 0x1f5   :  { %312 = vrot.lane.b32.xlu1 %v3523_v41, %s3621_s22 }
 0x267   :  { %v313_v42 = vpop.permute.xlu1 %312 }
 0x268   :  { %v315_v43 = vmul.f32 %v3521_v21, %v313_v42 }
 0x26a   :  { %323 = vrot.lane.b32.xlu1 %v315_v43, %s3622_s3 }
 0x2dc   :  { %v324_v55 = vpop.permute.xlu1 %323 }
 0x2dd   :  { %3002 = vmatmul.mubr.msk.f32.vlgmr.msra.gmra.mrb[2].mxu1 %vm216_vm3, %v324_v55  ;;  %3024 = vmatmul.mubr.msk.f32.vlgmr.msra.gmra.mrb[8].mxu0 %vm216_vm3, %v324_v55 }
 0x2de   :  { %3295 = vmatpush3.bf16.msra.mxu1 %v3816_v52  ;;  %3012 = vmatprep.mubr.msk.f32.mxu1 %vm3619_vm2, %v3620_v8 }
 0x2df   :  { %3296 = vmatprep.subr.bf16.mxu1 %v3618_v0  ;;  %3307 = vmatpush3.bf16.msra.mxu0 %v3767_v34 }
 0x2e0   :  { %3308 = vmatprep.subr.bf16.mxu0 %v3618_v0  ;;  %3034 = vmatprep.mubr.msk.f32.mxu0 %vm3619_vm2, %v3620_v8 }
 0x2e2   :  { %3298 = vmatpush3.bf16.msra.mxu1 %v3827_v56 }
 0x2e3   :  { %3317 = vmatprep.subr.bf16.mxu1 %v3618_v0  ;;  %3310 = vmatpush3.bf16.msra.mxu0 %v3783_v39 }
 0x2e4   :  { %3311 = vmatprep.subr.bf16.mxu0 %v3618_v0 }
 0x2e5   :  { %3013 = vmatmul.mubr.f32.vlgmr.msra.gmra.mrb[2].mxu1 %v3620_v8 }
 0x2e6   :  { %3319 = vmatpush3.bf16.msra.mxu1 %v3703_v4  ;;  %3056 = vmatprep.mubr.msk.f32.mxu1 %vm3619_vm2, %v3620_v8 }
 0x2e7   :  { %3320 = vmatprep.subr.bf16.mxu1 %v3618_v0 }
 0x2ea   :  { %3322 = vmatpush3.bf16.msra.mxu1 %v3724_v10 }
 0x2eb   :  { %3323 = vmatprep.subr.bf16.mxu1 %v3618_v0 }
 0x3b0   :  { %v560_v58 = vpop.f32.mrb[8].mxu0 }
 0x3b1   :  { %v564_v59 = vadd.f32 %v560_v58, %v161_v57  ;;  %v3025_v60 = vpop.f32.mrb[9].mxu0 }
 0x3b3   :  { %v2736_v61 = vmul.f32 -1.442695, %v564_v59 }
 0x3b5   :  { %3524 = vpow2.f32 %v2736_v61 }
 0x3b8   :  { %v463_v63 = vpop.f32.mrb[2].mxu1 }
 0x3b9   :  { %v3489_v1 = vadd.f32 %v3852_v62, %v463_v63  ;;  %v3014_v2 = vpop.f32.mrb[3].mxu1 }
 0x3bb   :  { %v2733_v3 = vmul.f32 -1.442695, %v3489_v1 }
 0x3bd   :  { %3526 = vpow2.f32 %v2733_v3 }
 0x3bf   :  { %v3525_v5 = vpop.eup %3524 }
 0x3c0   :  { %v568_v6 = vadd.f32 1.0, %v3525_v5 }
 0x3c2   :  { %3528 = vrcp.f32 %v568_v6 }
 0x3c7   :  { %v3527_v7 = vpop.eup %3526 }
 0x3c8   :  { %v471_v9 = vadd.f32 1.0, %v3527_v7 }
 0x3ca   :  { %3530 = vrcp.f32 %v471_v9 }
 0x3cc   :  { %v3529_v11 = vpop.eup %3528 }
 0x3cd   :  { %v571_v13 = vmul.f32 2.0, %v3529_v11  ;;  %v573_v22 = vmul.f32 %v3529_v11, %v3747_v28 }
 0x3cf   :  { %v2737_v14 = vadd.f32 -1.0, %v571_v13 }
 0x3d1   :  { %575 = vrot.lane.b32.xlu0 %v2737_v14, %s3621_s22 }
 0x3d4   :  { %v3531_v15 = vpop.eup %3530 }
 0x3d5   :  { %v474_v16 = vmul.f32 2.0, %v3531_v15  ;;  %v476_v25 = vmul.f32 0.0, %v3531_v15 }
 0x3d7   :  { %v2734_v17 = vadd.f32 -1.0, %v474_v16 }
 0x3d9   :  { %478 = vrot.lane.b32.xlu1 %v2734_v17, %s3621_s22 }
 0x443   :  { %v576_v18 = vpop.permute.xlu0 %575 }
 0x444   :  { %v578_v19 = vmul.f32 %v3529_v11, %v576_v18 }
 0x446   :  { %580 = vrot.lane.b32.xlu0 %v578_v19, %s3622_s3 }
 0x44b   :  { %v479_v20 = vpop.permute.xlu1 %478 }
 0x44c   :  { %v481_v21 = vmul.f32 %v3531_v15, %v479_v20 }
 0x44e   :  { %483 = vrot.lane.b32.xlu1 %v481_v21, %s3622_s3 }
 0x4b8   :  { %v581_v23 = vpop.permute.xlu0 %580 }
 0x4b9   :  { %v3860_v24 = vadd.f32 %v581_v23, %v573_v22 }
 0x4bb   :  { %3532 = vtanh.f32 %v3860_v24 }
 0x4c0   :  { %v484_v26 = vpop.permute.xlu1 %483 }
 0x4c1   :  { %v3863_v27 = vadd.f32 %v484_v26, %v476_v25 }
 0x4c3   :  { %3534 = vtanh.f32 %v3863_v27 }
 0x4c5   :  { %v3533_v29 = vpop.eup %3532 }
 0x4c6   :  { %586 = vrot.lane.b32.xlu0 %v3533_v29, %s3621_s22 }
 0x4cd   :  { %v3535_v30 = vpop.eup %3534 }
 0x4ce   :  { %489 = vrot.lane.b32.xlu1 %v3535_v30, %s3621_s22 }
 0x538   :  { %v587_v31 = vpop.permute.xlu0 %586 }
 0x539   :  { %v589_v32 = vmul.f32 %v3529_v11, %v587_v31 }
 0x53b   :  { %591 = vrot.lane.b32.xlu0 %v589_v32, %s3622_s3 }
 0x540   :  { %v490_v28 = vpop.permute.xlu1 %489 }
 0x541   :  { %v492_v33 = vmul.f32 %v3531_v15, %v490_v28 }
 0x543   :  { %666 = vrot.lane.b32.xlu1 %v492_v33, %s3622_s3 }
 0x5ad   :  { %v592_v35 = vpop.permute.xlu0 %591 }
 0x5ae   :  { %3035 = vmatmul.mubr.msk.f32.vlgmr.msra.gmra.mrb[10].mxu0 %vm216_vm3, %v592_v35  ;;  %3057 = vmatmul.mubr.msk.f32.vlgmr.msra.gmra.mrb[4].mxu1 %vm216_vm3, %v592_v35 }
 0x5af   :  { %3313 = vmatpush3.bf16.msra.mxu0 %v3816_v52  ;;  %3045 = vmatprep.mubr.msk.f32.mxu0 %vm3619_vm2, %v3620_v8 }
 0x5b0   :  { %3314 = vmatprep.subr.bf16.mxu0 %v3618_v0  ;;  %3325 = vmatpush3.bf16.msra.mxu1 %v3767_v34 }
 0x5b1   :  { %3326 = vmatprep.subr.bf16.mxu1 %v3618_v0  ;;  %3067 = vmatprep.mubr.msk.f32.mxu1 %vm3619_vm2, %v3620_v8 }
 0x5b3   :  { %3316 = vmatpush3.bf16.msra.mxu0 %v3827_v56 }
 0x5b4   :  { %3335 = vmatprep.subr.bf16.mxu0 %v3618_v0  ;;  %3328 = vmatpush3.bf16.msra.mxu1 %v3783_v39 }
 0x5b5   :  { %v667_v36 = vpop.permute.xlu1 %666  ;;  %3329 = vmatprep.subr.bf16.mxu1 %v3618_v0 }
 0x5b6   :  { %3046 = vmatmul.mubr.msk.f32.vlgmr.msra.gmra.mrb[10].mxu0 %vm216_vm3, %v667_v36 }
 0x5b7   :  { %3337 = vmatpush3.bf16.msra.mxu0 %v3703_v4  ;;  %3089 = vmatprep.mubr.msk.f32.mxu0 %vm3619_vm2, %v3620_v8 }
 0x5b8   :  { %3338 = vmatprep.subr.bf16.mxu0 %v3618_v0 }
 0x5bb   :  { %3340 = vmatpush3.bf16.msra.mxu0 %v3724_v10 }
 0x5bc   :  { %3341 = vmatprep.subr.bf16.mxu0 %v3618_v0 }
 0x681   :  { %v833_v38 = vpop.f32.mrb[4].mxu1 }
 0x682   :  { %v837_v40 = vadd.f32 %v833_v38, %v166_v37  ;;  %v3058_v41 = vpop.f32.mrb[5].mxu1 }
 0x684   :  { %v2743_v42 = vmul.f32 -1.442695, %v837_v40 }
 0x686   :  { %3536 = vpow2.f32 %v2743_v42 }
 0x689   :  { %v736_v43 = vpop.f32.mrb[10].mxu0 }
 0x68a   :  { %v3490_v50 = vadd.f32 %v3852_v62, %v736_v43  ;;  %v3047_v51 = vpop.f32.mrb[11].mxu0 }
 0x68c   :  { %v2740_v53 = vmul.f32 -1.442695, %v3490_v50 }
 0x68e   :  { %3538 = vpow2.f32 %v2740_v53 }
 0x690   :  { %v3537_v54 = vpop.eup %3536 }
 0x691   :  { %v841_v55 = vadd.f32 1.0, %v3537_v54 }
 0x693   :  { %3540 = vrcp.f32 %v841_v55 }
 0x698   :  { %v3539_v57 = vpop.eup %3538 }
 0x699   :  { %v744_v58 = vadd.f32 1.0, %v3539_v57 }
 0x69b   :  { %3542 = vrcp.f32 %v744_v58 }
 0x69d   :  { %v3541_v59 = vpop.eup %3540 }
 0x69e   :  { %v844_v60 = vmul.f32 2.0, %v3541_v59  ;;  %v846_v7 = vmul.f32 %v3541_v59, %v3860_v24  ;;  %v171_v24 = vadd.f32 %v3798_v44, %v3742_v12 }
 0x6a0   :  { %v2744_v45 = vadd.f32 -1.0, %v844_v60 }
 0x6a2   :  { %848 = vrot.lane.b32.xlu0 %v2744_v45, %s3621_s22 }
 0x6a5   :  { %v3543_v61 = vpop.eup %3542 }
 0x6a6   :  { %v747_v63 = vmul.f32 2.0, %v3543_v61  ;;  %v749_v13 = vmul.f32 %v3543_v61, %v3863_v27 }
 0x6a8   :  { %v2741_v1 = vadd.f32 -1.0, %v747_v63 }
 0x6aa   :  { %751 = vrot.lane.b32.xlu1 %v2741_v1, %s3621_s22 }
 0x714   :  { %v849_v2 = vpop.permute.xlu0 %848 }
 0x715   :  { %v851_v3 = vmul.f32 %v3541_v59, %v849_v2 }
 0x717   :  { %853 = vrot.lane.b32.xlu0 %v851_v3, %s3622_s3 }
 0x71c   :  { %v752_v5 = vpop.permute.xlu1 %751 }
 0x71d   :  { %v754_v6 = vmul.f32 %v3543_v61, %v752_v5 }
 0x71f   :  { %756 = vrot.lane.b32.xlu1 %v754_v6, %s3622_s3 }
 0x789   :  { %v854_v9 = vpop.permute.xlu0 %853 }
 0x78a   :  { %v3899_v11 = vadd.f32 %v854_v9, %v846_v7  ;;  %v176_v9 = vadd.f32 %v3742_v12, %v3804_v47 }
 0x78c   :  { %3544 = vtanh.f32 %v3899_v11 }
 0x791   :  { %v757_v14 = vpop.permute.xlu1 %756 }
 0x792   :  { %v3903_v15 = vadd.f32 %v757_v14, %v749_v13 }
 0x794   :  { %3546 = vtanh.f32 %v3903_v15 }
 0x796   :  { %v3545_v16 = vpop.eup %3544 }
 0x797   :  { %859 = vrot.lane.b32.xlu0 %v3545_v16, %s3621_s22 }
 0x79e   :  { %v3547_v17 = vpop.eup %3546 }
 0x79f   :  { %762 = vrot.lane.b32.xlu1 %v3547_v17, %s3621_s22 }
 0x809   :  { %v860_v18 = vpop.permute.xlu0 %859 }
 0x80a   :  { %v862_v19 = vmul.f32 %v3541_v59, %v860_v18 }
 0x80c   :  { %864 = vrot.lane.b32.xlu0 %v862_v19, %s3622_s3 }
 0x811   :  { %v763_v20 = vpop.permute.xlu1 %762 }
 0x812   :  { %v765_v21 = vmul.f32 %v3543_v61, %v763_v20 }
 0x814   :  { %939 = vrot.lane.b32.xlu1 %v765_v21, %s3622_s3 }
 0x87e   :  { %v865_v22 = vpop.permute.xlu0 %864 }
 0x87f   :  { %3068 = vmatmul.mubr.msk.f32.vlgmr.msra.gmra.mrb[6].mxu1 %vm216_vm3, %v865_v22  ;;  %3090 = vmatmul.mubr.msk.f32.vlgmr.msra.gmra.mrb[12].mxu0 %vm216_vm3, %v865_v22 }
 0x880   :  { %3331 = vmatpush3.bf16.msra.mxu1 %v3816_v52  ;;  %3078 = vmatprep.mubr.msk.f32.mxu1 %vm3619_vm2, %v3620_v8 }
 0x881   :  { %3332 = vmatprep.subr.bf16.mxu1 %v3618_v0  ;;  %3343 = vmatpush3.bf16.msra.mxu0 %v3767_v34 }
 0x882   :  { %3344 = vmatprep.subr.bf16.mxu0 %v3618_v0  ;;  %3100 = vmatprep.mubr.msk.f32.mxu0 %vm3619_vm2, %v3620_v8 }
 0x884   :  { %3334 = vmatpush3.bf16.msra.mxu1 %v3827_v56 }
 0x885   :  { %3353 = vmatprep.subr.bf16.mxu1 %v3618_v0  ;;  %3346 = vmatpush3.bf16.msra.mxu0 %v3783_v39 }
 0x886   :  { %v940_v23 = vpop.permute.xlu1 %939  ;;  %3347 = vmatprep.subr.bf16.mxu0 %v3618_v0 }
 0x887   :  { %3079 = vmatmul.mubr.msk.f32.vlgmr.msra.gmra.mrb[6].mxu1 %vm216_vm3, %v940_v23 }
 0x888   :  { %3355 = vmatpush3.bf16.msra.mxu1 %v3703_v4  ;;  %3122 = vmatprep.mubr.msk.f32.mxu1 %vm3619_vm2, %v3620_v8 }
 0x889   :  { %3356 = vmatprep.subr.bf16.mxu1 %v3618_v0 }
 0x88c   :  { %3358 = vmatpush3.bf16.msra.mxu1 %v3724_v10 }
 0x88d   :  { %3359 = vmatprep.subr.bf16.mxu1 %v3618_v0 }
 0x952   :  { %v1106_v25 = vpop.f32.mrb[12].mxu0 }
 0x953   :  { %v1110_v26 = vadd.f32 %v1106_v25, %v171_v24  ;;  %v3091_v27 = vpop.f32.mrb[13].mxu0 }
 0x955   :  { %v2750_v29 = vmul.f32 -1.442695, %v1110_v26 }
 0x957   :  { %3548 = vpow2.f32 %v2750_v29 }
 0x95a   :  { %v1009_v30 = vpop.f32.mrb[6].mxu1 }
 0x95b   :  { %v3491_v31 = vadd.f32 %v3852_v62, %v1009_v30  ;;  %v3080_v32 = vpop.f32.mrb[7].mxu1 }
 0x95d   :  { %v2747_v28 = vmul.f32 -1.442695, %v3491_v31 }
 0x95f   :  { %3550 = vpow2.f32 %v2747_v28 }
 0x961   :  { %v3549_v33 = vpop.eup %3548 }
 0x962   :  { %v1114_v35 = vadd.f32 1.0, %v3549_v33 }
 0x964   :  { %3552 = vrcp.f32 %v1114_v35 }
 0x969   :  { %v3551_v36 = vpop.eup %3550 }
 0x96a   :  { %v1017_v37 = vadd.f32 1.0, %v3551_v36 }
 0x96c   :  { %3554 = vrcp.f32 %v1017_v37 }
 0x96e   :  { %v3553_v38 = vpop.eup %3552 }
 0x96f   :  { %v1117_v40 = vmul.f32 2.0, %v3553_v38  ;;  %v1119_v55 = vmul.f32 %v3553_v38, %v3899_v11 }
 0x971   :  { %v2751_v44 = vadd.f32 -1.0, %v1117_v40 }
 0x973   :  { %1121 = vrot.lane.b32.xlu0 %v2751_v44, %s3621_s22 }
 0x976   :  { %v3555_v41 = vpop.eup %3554 }
 0x977   :  { %v1020_v42 = vmul.f32 2.0, %v3555_v41  ;;  %v1022_v59 = vmul.f32 %v3555_v41, %v3903_v15 }
 0x979   :  { %v2748_v43 = vadd.f32 -1.0, %v1020_v42 }
 0x97b   :  { %1024 = vrot.lane.b32.xlu1 %v2748_v43, %s3621_s22 }
 0x9e5   :  { %v1122_v50 = vpop.permute.xlu0 %1121 }
 0x9e6   :  { %v1124_v51 = vmul.f32 %v3553_v38, %v1122_v50 }
 0x9e8   :  { %1126 = vrot.lane.b32.xlu0 %v1124_v51, %s3622_s3 }
 0x9ed   :  { %v1025_v53 = vpop.permute.xlu1 %1024 }
 0x9ee   :  { %v1027_v54 = vmul.f32 %v3555_v41, %v1025_v53 }
 0x9f0   :  { %1029 = vrot.lane.b32.xlu1 %v1027_v54, %s3622_s3 }
 0xa5a   :  { %v1127_v57 = vpop.permute.xlu0 %1126 }
 0xa5b   :  { %v3939_v58 = vadd.f32 %v1127_v57, %v1119_v55  ;;  %v181_v55 = vadd.f32 %v3802_v46, %v3742_v12 }
 0xa5d   :  { %3556 = vtanh.f32 %v3939_v58 }
 0xa62   :  { %v1030_v60 = vpop.permute.xlu1 %1029 }
 0xa63   :  { %v3943_v45 = vadd.f32 %v1030_v60, %v1022_v59 }
 0xa65   :  { %3558 = vtanh.f32 %v3943_v45 }
 0xa67   :  { %v3557_v61 = vpop.eup %3556 }
 0xa68   :  { %1132 = vrot.lane.b32.xlu0 %v3557_v61, %s3621_s22 }
 0xa6f   :  { %v3559_v63 = vpop.eup %3558 }
 0xa70   :  { %1035 = vrot.lane.b32.xlu1 %v3559_v63, %s3621_s22 }
 0xada   :  { %v1133_v1 = vpop.permute.xlu0 %1132 }
 0xadb   :  { %v1135_v2 = vmul.f32 %v3553_v38, %v1133_v1 }
 0xadd   :  { %1137 = vrot.lane.b32.xlu0 %v1135_v2, %s3622_s3 }
 0xae2   :  { %v1036_v3 = vpop.permute.xlu1 %1035 }
 0xae3   :  { %v1038_v5 = vmul.f32 %v3555_v41, %v1036_v3 }
 0xae5   :  { %1212 = vrot.lane.b32.xlu1 %v1038_v5, %s3622_s3 }
 0xb4f   :  { %v1138_v6 = vpop.permute.xlu0 %1137 }
 0xb50   :  { %3101 = vmatmul.mubr.msk.f32.vlgmr.msra.gmra.mrb[14].mxu0 %vm216_vm3, %v1138_v6  ;;  %3123 = vmatmul.mubr.msk.f32.vlgmr.msra.gmra.mrb[8].mxu1 %vm216_vm3, %v1138_v6 }
 0xb51   :  { %3349 = vmatpush3.bf16.msra.mxu0 %v3816_v52  ;;  %3111 = vmatprep.mubr.msk.f32.mxu0 %vm3619_vm2, %v3620_v8 }
 0xb52   :  { %3350 = vmatprep.subr.bf16.mxu0 %v3618_v0  ;;  %3361 = vmatpush3.bf16.msra.mxu1 %v3767_v34 }
 0xb53   :  { %3362 = vmatprep.subr.bf16.mxu1 %v3618_v0  ;;  %3133 = vmatprep.mubr.msk.f32.mxu1 %vm3619_vm2, %v3620_v8 }
 0xb55   :  { %3352 = vmatpush3.bf16.msra.mxu0 %v3827_v56 }
 0xb56   :  { %3371 = vmatprep.subr.bf16.mxu0 %v3618_v0  ;;  %3364 = vmatpush3.bf16.msra.mxu1 %v3783_v39 }
 0xb57   :  { %v1213_v7 = vpop.permute.xlu1 %1212  ;;  %3365 = vmatprep.subr.bf16.mxu1 %v3618_v0 }
 0xb58   :  { %3112 = vmatmul.mubr.msk.f32.vlgmr.msra.gmra.mrb[14].mxu0 %vm216_vm3, %v1213_v7 }
 0xb59   :  { %3373 = vmatpush3.bf16.msra.mxu0 %v3703_v4  ;;  %3155 = vmatprep.mubr.msk.f32.mxu0 %vm3619_vm2, %v3620_v8 }
 0xb5a   :  { %3374 = vmatprep.subr.bf16.mxu0 %v3618_v0 }
 0xb5d   :  { %3376 = vmatpush3.bf16.msra.mxu0 %v3724_v10 }
 0xb5e   :  { %3377 = vmatprep.subr.bf16.mxu0 %v3618_v0 }
 0xc23   :  { %v1379_v11 = vpop.f32.mrb[8].mxu1 }
 0xc24   :  { %v1383_v13 = vadd.f32 %v1379_v11, %v176_v9  ;;  %v3124_v14 = vpop.f32.mrb[9].mxu1 }
 0xc26   :  { %v2757_v15 = vmul.f32 -1.442695, %v1383_v13 }
 0xc28   :  { %3560 = vpow2.f32 %v2757_v15 }
 0xc2b   :  { %v1282_v16 = vpop.f32.mrb[14].mxu0 }
 0xc2c   :  { %v3492_v17 = vadd.f32 %v3852_v62, %v1282_v16  ;;  %v3113_v18 = vpop.f32.mrb[15].mxu0 }
 0xc2e   :  { %v2754_v19 = vmul.f32 -1.442695, %v3492_v17 }
 0xc30   :  { %3562 = vpow2.f32 %v2754_v19 }
 0xc32   :  { %v3561_v20 = vpop.eup %3560 }
 0xc33   :  { %v1387_v21 = vadd.f32 1.0, %v3561_v20 }
 0xc35   :  { %3564 = vrcp.f32 %v1387_v21 }
 0xc3a   :  { %v3563_v22 = vpop.eup %3562 }
 0xc3b   :  { %v1290_v23 = vadd.f32 1.0, %v3563_v22 }
 0xc3d   :  { %3566 = vrcp.f32 %v1290_v23 }
 0xc3f   :  { %v3565_v24 = vpop.eup %3564 }
 0xc40   :  { %v1390_v25 = vmul.f32 2.0, %v3565_v24  ;;  %v1392_v33 = vmul.f32 %v3565_v24, %v3939_v58 }
 0xc42   :  { %v2758_v47 = vadd.f32 -1.0, %v1390_v25 }
 0xc44   :  { %1394 = vrot.lane.b32.xlu0 %v2758_v47, %s3621_s22 }
 0xc47   :  { %v3567_v26 = vpop.eup %3566 }
 0xc48   :  { %v1293_v27 = vmul.f32 2.0, %v3567_v26  ;;  %v1295_v37 = vmul.f32 %v3567_v26, %v3943_v45 }
 0xc4a   :  { %v2755_v29 = vadd.f32 -1.0, %v1293_v27 }
 0xc4c   :  { %1297 = vrot.lane.b32.xlu1 %v2755_v29, %s3621_s22 }
 0xcb6   :  { %v1395_v30 = vpop.permute.xlu0 %1394 }
 0xcb7   :  { %v1397_v31 = vmul.f32 %v3565_v24, %v1395_v30 }
 0xcb9   :  { %1399 = vrot.lane.b32.xlu0 %v1397_v31, %s3622_s3 }
 0xcbe   :  { %v1298_v32 = vpop.permute.xlu1 %1297 }
 0xcbf   :  { %v1300_v28 = vmul.f32 %v3567_v26, %v1298_v32 }
 0xcc1   :  { %1302 = vrot.lane.b32.xlu1 %v1300_v28, %s3622_s3  ;;  %v186_v28 = vadd.f32 %v3742_v12, %v3808_v49 }
 0xd2b   :  { %v1400_v35 = vpop.permute.xlu0 %1399 }
 0xd2c   :  { %v3979_v36 = vadd.f32 %v1400_v35, %v1392_v33 }
 0xd2e   :  { %3568 = vtanh.f32 %v3979_v36 }
 0xd33   :  { %v1303_v38 = vpop.permute.xlu1 %1302 }
 0xd34   :  { %v3983_v40 = vadd.f32 %v1303_v38, %v1295_v37 }
 0xd36   :  { %3570 = vtanh.f32 %v3983_v40 }
 0xd38   :  { %v3569_v44 = vpop.eup %3568 }
 0xd39   :  { %1405 = vrot.lane.b32.xlu0 %v3569_v44, %s3621_s22 }
 0xd40   :  { %v3571_v41 = vpop.eup %3570 }
 0xd41   :  { %1308 = vrot.lane.b32.xlu1 %v3571_v41, %s3621_s22 }
 0xdab   :  { %v1406_v42 = vpop.permute.xlu0 %1405 }
 0xdac   :  { %v1408_v43 = vmul.f32 %v3565_v24, %v1406_v42 }
 0xdae   :  { %1410 = vrot.lane.b32.xlu0 %v1408_v43, %s3622_s3 }
 0xdb3   :  { %v1309_v50 = vpop.permute.xlu1 %1308 }
 0xdb4   :  { %v1311_v51 = vmul.f32 %v3567_v26, %v1309_v50 }
 0xdb6   :  { %1485 = vrot.lane.b32.xlu1 %v1311_v51, %s3622_s3 }
 0xe20   :  { %v1411_v53 = vpop.permute.xlu0 %1410 }
 0xe21   :  { %3134 = vmatmul.mubr.msk.f32.vlgmr.msra.gmra.mrb[10].mxu1 %vm216_vm3, %v1411_v53  ;;  %3156 = vmatmul.mubr.msk.f32.vlgmr.msra.gmra.mrb[16].mxu0 %vm216_vm3, %v1411_v53 }
 0xe22   :  { %3367 = vmatpush3.bf16.msra.mxu1 %v3816_v52  ;;  %3144 = vmatprep.mubr.msk.f32.mxu1 %vm3619_vm2, %v3620_v8 }
 0xe23   :  { %3368 = vmatprep.subr.bf16.mxu1 %v3618_v0  ;;  %3379 = vmatpush3.bf16.msra.mxu0 %v3767_v34 }
 0xe24   :  { %3380 = vmatprep.subr.bf16.mxu0 %v3618_v0  ;;  %3166 = vmatprep.mubr.msk.f32.mxu0 %vm3619_vm2, %v3620_v8 }
 0xe26   :  { %3370 = vmatpush3.bf16.msra.mxu1 %v3827_v56 }
 0xe27   :  { %3389 = vmatprep.subr.bf16.mxu1 %v3618_v0  ;;  %3382 = vmatpush3.bf16.msra.mxu0 %v3783_v39 }
 0xe28   :  { %v1486_v54 = vpop.permute.xlu1 %1485  ;;  %3383 = vmatprep.subr.bf16.mxu0 %v3618_v0 }
 0xe29   :  { %3145 = vmatmul.mubr.msk.f32.vlgmr.msra.gmra.mrb[10].mxu1 %vm216_vm3, %v1486_v54 }
 0xe2a   :  { %3391 = vmatpush3.bf16.msra.mxu1 %v3703_v4  ;;  %3188 = vmatprep.mubr.msk.f32.mxu1 %vm3619_vm2, %v3620_v8 }
 0xe2b   :  { %3392 = vmatprep.subr.bf16.mxu1 %v3618_v0 }
 0xe2e   :  { %3394 = vmatpush3.bf16.msra.mxu1 %v3724_v10 }
 0xe2f   :  { %3395 = vmatprep.subr.bf16.mxu1 %v3618_v0 }
 0xef4   :  { %v1652_v57 = vpop.f32.mrb[16].mxu0 }
 0xef5   :  { %v1656_v58 = vadd.f32 %v1652_v57, %v181_v55  ;;  %v3157_v59 = vpop.f32.mrb[17].mxu0 }
 0xef7   :  { %v2764_v60 = vmul.f32 -1.442695, %v1656_v58 }
 0xef9   :  { %3572 = vpow2.f32 %v2764_v60 }
 0xefc   :  { %v1555_v45 = vpop.f32.mrb[10].mxu1 }
 0xefd   :  { %v3493_v61 = vadd.f32 %v3852_v62, %v1555_v45  ;;  %v3146_v63 = vpop.f32.mrb[11].mxu1 }
 0xeff   :  { %v2761_v1 = vmul.f32 -1.442695, %v3493_v61 }
 0xf01   :  { %3574 = vpow2.f32 %v2761_v1 }
 0xf03   :  { %v3573_v2 = vpop.eup %3572 }
 0xf04   :  { %v1660_v3 = vadd.f32 1.0, %v3573_v2 }
 0xf06   :  { %3576 = vrcp.f32 %v1660_v3 }
 0xf0b   :  { %v3575_v5 = vpop.eup %3574 }
 0xf0c   :  { %v1563_v6 = vadd.f32 1.0, %v3575_v5 }
 0xf0e   :  { %3578 = vrcp.f32 %v1563_v6 }
 0xf10   :  { %v3577_v7 = vpop.eup %3576 }
 0xf11   :  { %v1663_v9 = vmul.f32 2.0, %v3577_v7  ;;  %v1665_v19 = vmul.f32 %v3577_v7, %v3979_v36 }
 0xf13   :  { %v2765_v46 = vadd.f32 -1.0, %v1663_v9 }
 0xf15   :  { %1667 = vrot.lane.b32.xlu0 %v2765_v46, %s3621_s22 }
 0xf18   :  { %v3579_v11 = vpop.eup %3578 }
 0xf19   :  { %v1566_v13 = vmul.f32 2.0, %v3579_v11  ;;  %v1568_v22 = vmul.f32 %v3579_v11, %v3983_v40 }
 0xf1b   :  { %v2762_v14 = vadd.f32 -1.0, %v1566_v13 }
 0xf1d   :  { %1570 = vrot.lane.b32.xlu1 %v2762_v14, %s3621_s22 }
 0xf87   :  { %v1668_v15 = vpop.permute.xlu0 %1667 }
 0xf88   :  { %v1670_v16 = vmul.f32 %v3577_v7, %v1668_v15  ;;  %v191_v15 = vadd.f32 %v3806_v48, %v3742_v12 }
 0xf8a   :  { %1672 = vrot.lane.b32.xlu0 %v1670_v16, %s3622_s3 }
 0xf8f   :  { %v1571_v17 = vpop.permute.xlu1 %1570 }
 0xf90   :  { %v1573_v18 = vmul.f32 %v3579_v11, %v1571_v17 }
 0xf92   :  { %1575 = vrot.lane.b32.xlu1 %v1573_v18, %s3622_s3 }
 0xffc   :  { %v1673_v20 = vpop.permute.xlu0 %1672 }
 0xffd   :  { %v4019_v21 = vadd.f32 %v1673_v20, %v1665_v19 }
 0xfff   :  { %3580 = vtanh.f32 %v4019_v21 }
0x1004   :  { %v1576_v23 = vpop.permute.xlu1 %1575 }
0x1005   :  { %v4023_v24 = vadd.f32 %v1576_v23, %v1568_v22 }
0x1007   :  { %3582 = vtanh.f32 %v4023_v24 }
0x1009   :  { %v3581_v25 = vpop.eup %3580 }
0x100a   :  { %1678 = vrot.lane.b32.xlu0 %v3581_v25, %s3621_s22 }
0x1011   :  { %v3583_v47 = vpop.eup %3582 }
0x1012   :  { %1581 = vrot.lane.b32.xlu1 %v3583_v47, %s3621_s22 }
0x107c   :  { %v1679_v26 = vpop.permute.xlu0 %1678 }
0x107d   :  { %v1681_v27 = vmul.f32 %v3577_v7, %v1679_v26 }
0x107f   :  { %1683 = vrot.lane.b32.xlu0 %v1681_v27, %s3622_s3 }
0x1084   :  { %v1582_v29 = vpop.permute.xlu1 %1581 }
0x1085   :  { %v1584_v30 = vmul.f32 %v3579_v11, %v1582_v29 }
0x1087   :  { %1758 = vrot.lane.b32.xlu1 %v1584_v30, %s3622_s3 }
0x10f1   :  { %v1684_v31 = vpop.permute.xlu0 %1683 }
0x10f2   :  { %3167 = vmatmul.mubr.msk.f32.vlgmr.msra.gmra.mrb[18].mxu0 %vm216_vm3, %v1684_v31  ;;  %3189 = vmatmul.mubr.msk.f32.vlgmr.msra.gmra.mrb[12].mxu1 %vm216_vm3, %v1684_v31 }
0x10f3   :  { %3385 = vmatpush3.bf16.msra.mxu0 %v3816_v52  ;;  %3177 = vmatprep.mubr.msk.f32.mxu0 %vm3619_vm2, %v3620_v8 }
0x10f4   :  { %3386 = vmatprep.subr.bf16.mxu0 %v3618_v0  ;;  %3397 = vmatpush3.bf16.msra.mxu1 %v3767_v34 }
0x10f5   :  { %3398 = vmatprep.subr.bf16.mxu1 %v3618_v0  ;;  %3199 = vmatprep.mubr.msk.f32.mxu1 %vm3619_vm2, %v3620_v8 }
0x10f7   :  { %3388 = vmatpush3.bf16.msra.mxu0 %v3827_v56 }
0x10f8   :  { %3407 = vmatprep.subr.bf16.mxu0 %v3618_v0  ;;  %3400 = vmatpush3.bf16.msra.mxu1 %v3783_v39 }
0x10f9   :  { %v1759_v32 = vpop.permute.xlu1 %1758  ;;  %3401 = vmatprep.subr.bf16.mxu1 %v3618_v0 }
0x10fa   :  { %3178 = vmatmul.mubr.msk.f32.vlgmr.msra.gmra.mrb[18].mxu0 %vm216_vm3, %v1759_v32 }
0x10fb   :  { %3409 = vmatpush3.bf16.msra.mxu0 %v3703_v4  ;;  %3221 = vmatprep.mubr.msk.f32.mxu0 %vm3619_vm2, %v3620_v8 }
0x10fc   :  { %3410 = vmatprep.subr.bf16.mxu0 %v3618_v0 }
0x10ff   :  { %3412 = vmatpush3.bf16.msra.mxu0 %v3724_v10 }
0x1100   :  { %3413 = vmatprep.subr.bf16.mxu0 %v3618_v0 }
0x11c5   :  { %v1925_v33 = vpop.f32.mrb[12].mxu1 }
0x11c6   :  { %v1929_v35 = vadd.f32 %v1925_v33, %v186_v28  ;;  %v3190_v36 = vpop.f32.mrb[13].mxu1 }
0x11c8   :  { %v2771_v37 = vmul.f32 -1.442695, %v1929_v35 }
0x11ca   :  { %3584 = vpow2.f32 %v2771_v37 }
0x11cd   :  { %v1828_v38 = vpop.f32.mrb[18].mxu0 }
0x11ce   :  { %v3494_v4 = vadd.f32 %v3852_v62, %v1828_v38  ;;  %v3179_v40 = vpop.f32.mrb[19].mxu0 }
0x11d0   :  { %v2768_v44 = vmul.f32 -1.442695, %v3494_v4 }
0x11d2   :  { %3586 = vpow2.f32 %v2768_v44 }
0x11d4   :  { %v3585_v41 = vpop.eup %3584 }
0x11d5   :  { %v1933_v42 = vadd.f32 1.0, %v3585_v41 }
0x11d7   :  { %3588 = vrcp.f32 %v1933_v42 }
0x11dc   :  { %v3587_v10 = vpop.eup %3586 }
0x11dd   :  { %v1836_v43 = vadd.f32 1.0, %v3587_v10 }
0x11df   :  { %3590 = vrcp.f32 %v1836_v43 }
0x11e1   :  { %v3589_v50 = vpop.eup %3588 }
0x11e2   :  { %v1936_v51 = vmul.f32 2.0, %v3589_v50  ;;  %v1938_v45 = vmul.f32 %v3589_v50, %v4019_v21 }
0x11e4   :  { %v2772_v49 = vadd.f32 -1.0, %v1936_v51 }
0x11e6   :  { %1940 = vrot.lane.b32.xlu0 %v2772_v49, %s3621_s22 }
0x11e9   :  { %v3591_v53 = vpop.eup %3590 }
0x11ea   :  { %v1839_v54 = vmul.f32 2.0, %v3591_v53  ;;  %v1841_v1 = vmul.f32 %v3591_v53, %v4023_v24 }
0x11ec   :  { %v2769_v55 = vadd.f32 -1.0, %v1839_v54 }
0x11ee   :  { %1843 = vrot.lane.b32.xlu1 %v2769_v55, %s3621_s22 }
0x1258   :  { %v1941_v57 = vpop.permute.xlu0 %1940 }
0x1259   :  { %v1943_v58 = vmul.f32 %v3589_v50, %v1941_v57 }
0x125b   :  { %1945 = vrot.lane.b32.xlu0 %v1943_v58, %s3622_s3 }
0x1260   :  { %v1844_v59 = vpop.permute.xlu1 %1843 }
0x1261   :  { %v1846_v60 = vmul.f32 %v3591_v53, %v1844_v59 }
0x1263   :  { %1848 = vrot.lane.b32.xlu1 %v1846_v60, %s3622_s3 }
0x12cd   :  { %v1946_v61 = vpop.permute.xlu0 %1945 }
0x12ce   :  { %v1948_v63 = vadd.f32 %v1946_v61, %v1938_v45 }
0x12d0   :  { %3592 = vtanh.f32 %v1948_v63 }
0x12d5   :  { %v1849_v2 = vpop.permute.xlu1 %1848 }
0x12d6   :  { %v1851_v3 = vadd.f32 %v1849_v2, %v1841_v1  ;;  %v2407_v1 = vld [vmem:[%s4300_s7 + $0x18] sm:$0xff]  ;;  %v2404_v2 = vld [vmem:[%s4300_s7] sm:$0xff] }
0x12d8   :  { %3594 = vtanh.f32 %v1851_v3 }
0x12da   :  { %v3593_v5 = vpop.eup %3592 }
0x12db   :  { %1951 = vrot.lane.b32.xlu0 %v3593_v5, %s3621_s22  ;;  %v2406_v5 = vld [vmem:[%s4300_s7 + $0x10] sm:$0xff] }
0x12e2   :  { %v3595_v6 = vpop.eup %3594 }
0x12e3   :  { %1854 = vrot.lane.b32.xlu1 %v3595_v6, %s3621_s22  ;;  %v2409_v6 = vld [vmem:[%s4300_s7 + $0x28] sm:$0xff] }
0x134d   :  { %v1952_v7 = vpop.permute.xlu0 %1951 }
0x134e   :  { %v1954_v9 = vmul.f32 %v3589_v50, %v1952_v7  ;;  %v2411_v7 = vld [vmem:[%s4300_s7 + $0x38] sm:$0xff] }
0x1350   :  { %1956 = vrot.lane.b32.xlu0 %v1954_v9, %s3622_s3  ;;  %v3427_v9 = vpack.c.bf16 %v2406_v5, %v2404_v2  ;;  %v2613_v2 = vld [vmem:[%s4302_s11 + $0x8] sm:$0xff] }
0x1355   :  { %v1855_v46 = vpop.permute.xlu1 %1854 }
0x1356   :  { %v1857_v11 = vmul.f32 %v3591_v53, %v1855_v46  ;;  %v3429_v46 = vpack.c.bf16 %v2411_v7, %v2409_v6  ;;  %v2615_v6 = vld [vmem:[%s4302_s11 + $0x18] sm:$0xff] }
0x1358   :  { %2031 = vrot.lane.b32.xlu1 %v1857_v11, %s3622_s3  ;;  %v2408_v11 = vld [vmem:[%s4300_s7 + $0x20] sm:$0xff] }
0x13c2   :  { %v1957_v13 = vpop.permute.xlu0 %1956 }
0x13c3   :  { %3200 = vmatmul.mubr.msk.f32.vlgmr.msra.gmra.mrb[14].mxu1 %vm216_vm3, %v1957_v13  ;;  %3222 = vmatmul.mubr.msk.f32.vlgmr.msra.gmra.mrb[20].mxu0 %vm216_vm3, %v1957_v13  ;;  %v2410_v13 = vld [vmem:[%s4300_s7 + $0x30] sm:$0xff] }
0x13c4   :  { %3403 = vmatpush3.bf16.msra.mxu1 %v3816_v52  ;;  %3210 = vmatprep.mubr.msk.f32.mxu1 %vm3619_vm2, %v3620_v8 }
0x13c5   :  { %3404 = vmatprep.subr.bf16.mxu1 %v3618_v0  ;;  %3415 = vmatpush3.bf16.msra.mxu0 %v3767_v34 }
0x13c6   :  { %3416 = vmatprep.subr.bf16.mxu0 %v3618_v0  ;;  %3232 = vmatprep.mubr.msk.f32.mxu0 %vm3619_vm2, %v3620_v8 }
0x13c8   :  { %3406 = vmatpush3.bf16.msra.mxu1 %v3827_v56 }
0x13c9   :  { %3418 = vmatpush3.bf16.msra.mxu0 %v3783_v39 }
0x13ca   :  { %v2032_v14 = vpop.permute.xlu1 %2031  ;;  %3419 = vmatprep.subr.bf16.mxu0 %v3618_v0 }
0x13cb   :  { %3211 = vmatmul.mubr.msk.f32.vlgmr.msra.gmra.mrb[14].mxu1 %vm216_vm3, %v2032_v14  ;;  %v3431_v14 = vpack.c.bf16 %v2410_v13, %v2408_v11  ;;  %v2618_v13 = vld [vmem:[%s4302_s11 + $0x30] sm:$0xff] }
0x13cc   :  { %2493 = vmatprep.mubr.f32.mxu1 %v3620_v8 }
0x1496   :  { %v2198_v34 = vpop.f32.mrb[20].mxu0 }
0x1497   :  { %v2202_v16 = vadd.f32 %v2198_v34, %v191_v15  ;;  %v3223_v17 = vpop.f32.mrb[21].mxu0  ;;  %v2518_v34 = vld [vmem:[%s4301_s9 + $0x80] sm:$0xff] }
0x1499   :  { %v2778_v18 = vmul.f32 -1.442695, %v2202_v16  ;;  %v2519_v16 = vld [vmem:[%s4301_s9 + $0x88] sm:$0xff] }
0x149a   :  { %v3433_v17 = vpack.c.bf16 %v2519_v16, %v2518_v34  ;;  %v2620_v34 = vld [vmem:[%s4302_s11 + $0x40] sm:$0xff]  ;;  %v2621_v16 = vld [vmem:[%s4302_s11 + $0x48] sm:$0xff] }
0x149b   :  { %3596 = vpow2.f32 %v2778_v18 }
0x149e   :  { %v2101_v19 = vpop.f32.mrb[14].mxu1 }
0x149f   :  { %v3495_v20 = vadd.f32 %v3852_v62, %v2101_v19  ;;  %v3212_v21 = vpop.f32.mrb[15].mxu1 }
0x14a0   :  { %v2503_v21 = vld [vmem:[%s4301_s9 + $0x8] sm:$0xff] }
0x14a1   :  { %v2775_v39 = vmul.f32 -1.442695, %v3495_v20  ;;  %v2502_v20 = vld [vmem:[%s4301_s9] sm:$0xff] }
0x14a3   :  { %3598 = vpow2.f32 %v2775_v39  ;;  %v2520_v39 = vld [vmem:[%s4301_s9 + $0x90] sm:$0xff] }
0x14a5   :  { %v3597_v22 = vpop.eup %3596 }
0x14a6   :  { %v2206_v23 = vadd.f32 1.0, %v3597_v22  ;;  %v2521_v22 = vld [vmem:[%s4301_s9 + $0x98] sm:$0xff] }
0x14a8   :  { %3600 = vrcp.f32 %v2206_v23  ;;  %v3435_v23 = vpack.c.bf16 %v2503_v21, %v2502_v20  ;;  %v2414_v21 = vlaneseq }
0x14ad   :  { %v3599_v24 = vpop.eup %3598 }
0x14ae   :  { %v2109_v25 = vadd.f32 1.0, %v3599_v24  ;;  %v3437_v24 = vpack.c.bf16 %v2521_v22, %v2520_v39  ;;  %v2415_v39 = vshrl.u32 %v2414_v21, 7 }
0x14b0   :  { %3602 = vrcp.f32 %v2109_v25  ;;  %v2504_v25 = vld [vmem:[%s4301_s9 + $0x10] sm:$0xff]  ;;  %v2416_v22 = vsub.s32 0, %v2415_v39 }
0x14b2   :  { %v3601_v47 = vpop.eup %3600 }
0x14b3   :  { %v2209_v26 = vmul.f32 2.0, %v3601_v47  ;;  %v2211_v33 = vmul.f32 %v3601_v47, %v1948_v63 }
0x14b5   :  { %v2779_v12 = vadd.f32 -1.0, %v2209_v26 }
0x14b7   :  { %2213 = vrot.lane.b32.xlu0 %v2779_v12, %s3621_s22  ;;  %v2522_v12 = vld [vmem:[%s4301_s9 + $0xa0] sm:$0xff] }
0x14ba   :  { %v3603_v48 = vpop.eup %3602 }
0x14bb   :  { %v2112_v27 = vmul.f32 2.0, %v3603_v48  ;;  %v2114_v37 = vmul.f32 %v3603_v48, %v1851_v3 }
0x14bd   :  { %v2776_v29 = vadd.f32 -1.0, %v2112_v27 }
0x14bf   :  { %2116 = vrot.lane.b32.xlu1 %v2776_v29, %s3621_s22 }
0x1529   :  { %v2214_v30 = vpop.permute.xlu0 %2213 }
0x152a   :  { %v2216_v31 = vmul.f32 %v3601_v47, %v2214_v30  ;;  %v2506_v30 = vld [vmem:[%s4301_s9 + $0x20] sm:$0xff] }
0x152c   :  { %2218 = vrot.lane.b32.xlu0 %v2216_v31, %s3622_s3  ;;  %v2507_v31 = vld [vmem:[%s4301_s9 + $0x28] sm:$0xff] }
0x1531   :  { %v2117_v32 = vpop.permute.xlu1 %2116 }
0x1532   :  { %v2119_v28 = vmul.f32 %v3603_v48, %v2117_v32  ;;  %v2524_v32 = vld [vmem:[%s4301_s9 + $0xb0] sm:$0xff] }
0x1534   :  { %2121 = vrot.lane.b32.xlu1 %v2119_v28, %s3622_s3  ;;  %v2525_v28 = vld [vmem:[%s4301_s9 + $0xb8] sm:$0xff] }
0x159e   :  { %v2219_v35 = vpop.permute.xlu0 %2218 }
0x159f   :  { %v2221_v36 = vadd.f32 %v2219_v35, %v2211_v33  ;;  %v3443_v33 = vpack.c.bf16 %v2507_v31, %v2506_v30  ;;  %v3445_v35 = vpack.c.bf16 %v2525_v28, %v2524_v32  ;;  %v2624_v31 = vld [vmem:[%s4302_s11 + $0x60] sm:$0xff]  ;;  %v2625_v32 = vld [vmem:[%s4302_s11 + $0x68] sm:$0xff] }
0x15a0   :  { %v3484_v28 = vpack.c.bf16 %v2625_v32, %v2624_v31 }
0x15a1   :  { %3604 = vtanh.f32 %v2221_v36  ;;  %v2508_v36 = vld [vmem:[%s4301_s9 + $0x30] sm:$0xff] }
0x15a6   :  { %v2122_v38 = vpop.permute.xlu1 %2121 }
0x15a7   :  { %v2124_v4 = vadd.f32 %v2122_v38, %v2114_v37  ;;  %v2509_v37 = vld [vmem:[%s4301_s9 + $0x38] sm:$0xff]  ;;  %v2526_v38 = vld [vmem:[%s4301_s9 + $0xc0] sm:$0xff] }
0x15a9   :  { %3606 = vtanh.f32 %v2124_v4 }
0x15ab   :  { %v3605_v40 = vpop.eup %3604 }
0x15ac   :  { %2224 = vrot.lane.b32.xlu0 %v3605_v40, %s3621_s22  ;;  %v3447_v40 = vpack.c.bf16 %v2509_v37, %v2508_v36 }
0x15b3   :  { %v3607_v44 = vpop.eup %3606 }
0x15b4   :  { %2127 = vrot.lane.b32.xlu1 %v3607_v44, %s3621_s22 }
0x161e   :  { %v2225_v41 = vpop.permute.xlu0 %2224 }
0x161f   :  { %v2227_v42 = vmul.f32 %v3601_v47, %v2225_v41  ;;  %v2505_v47 = vld [vmem:[%s4301_s9 + $0x18] sm:$0xff]  ;;  %v2510_v41 = vld [vmem:[%s4301_s9 + $0x40] sm:$0xff] }
0x1620   :  { %v3439_v27 = vpack.c.bf16 %v2505_v47, %v2504_v25 }
0x1621   :  { %2229 = vrot.lane.b32.xlu0 %v2227_v42, %s3622_s3  ;;  %v2511_v42 = vld [vmem:[%s4301_s9 + $0x48] sm:$0xff] }
0x1626   :  { %v2128_v10 = vpop.permute.xlu1 %2127 }
0x1627   :  { %v2130_v43 = vmul.f32 %v3603_v48, %v2128_v10  ;;  %v2523_v48 = vld [vmem:[%s4301_s9 + $0xa8] sm:$0xff]  ;;  %v2528_v10 = vld [vmem:[%s4301_s9 + $0xd0] sm:$0xff] }
0x1628   :  { %v3441_v29 = vpack.c.bf16 %v2523_v48, %v2522_v12 }
0x1629   :  { %2304 = vrot.lane.b32.xlu1 %v2130_v43, %s3622_s3  ;;  %v2529_v43 = vld [vmem:[%s4301_s9 + $0xd8] sm:$0xff] }
0x1693   :  { %v2230_v50 = vpop.permute.xlu0 %2229 }
0x1694   :  { %3233 = vmatmul.mubr.msk.f32.vlgmr.msra.gmra.mrb[22].mxu0 %vm216_vm3, %v2230_v50  ;;  %v3451_v50 = vpack.c.bf16 %v2511_v42, %v2510_v41 }
0x1695   :  { %3421 = vmatpush3.bf16.msra.mxu0 %v3816_v52  ;;  %3243 = vmatprep.mubr.msk.f32.mxu0 %vm3619_vm2, %v3620_v8 }
0x1696   :  { %3422 = vmatprep.subr.bf16.mxu0 %v3618_v0 }
0x1699   :  { %3424 = vmatpush3.bf16.msra.mxu0 %v3827_v56 }
0x169a   :  { %3465 = vmatprep.subr.bf16.mxu0 %v3618_v0 }
0x169b   :  { %v2305_v51 = vpop.permute.xlu1 %2304 }
0x169c   :  { %3244 = vmatmul.mubr.msk.f32.vlgmr.msra.gmra.mrb[22].mxu0 %vm216_vm3, %v2305_v51  ;;  %v3453_v51 = vpack.c.bf16 %v2529_v43, %v2528_v10 }
0x169d   :  { %3278 = vmatprep.mubr.msk.f32.mxu0 %vm3619_vm2, %v3620_v8 }
0x176f   :  { %v2374_v49 = vpop.f32.mrb[22].mxu0 }
0x1770   :  { %v3496_v53 = vadd.f32 %v3852_v62, %v2374_v49  ;;  %v3245_v54 = vpop.f32.mrb[23].mxu0  ;;  %v2405_v62 = vld [vmem:[%s4300_s7 + $0x8] sm:$0xff]  ;;  %v2512_v49 = vld [vmem:[%s4301_s9 + $0x50] sm:$0xff] }
0x1771   :  { %v3425_v3 = vpack.c.bf16 %v2407_v1, %v2405_v62  ;;  %v2530_v54 = vld [vmem:[%s4301_s9 + $0xe0] sm:$0xff] }
0x1772   :  { %v2782_v52 = vmul.f32 -1.442695, %v3496_v53  ;;  %v2513_v53 = vld [vmem:[%s4301_s9 + $0x58] sm:$0xff]  ;;  %v2612_v1 = vld [vmem:[%s4302_s11] sm:$0xff] }
0x1773   :  { %3426 = vmatprep.subr.bf16.mxu1 %v3425_v3  ;;  %v2614_v3 = vld [vmem:[%s4302_s11 + $0x10] sm:$0xff]  ;;  %v3466_v5 = vpack.c.bf16 %v2613_v2, %v2612_v1 }
0x1774   :  { %3608 = vpow2.f32 %v2782_v52  ;;  %3428 = vmatpush1.bf16.msra.mxu1 %v3427_v9  ;;  %v2531_v52 = vld [vmem:[%s4301_s9 + $0xe8] sm:$0xff]  ;;  %v3469_v7 = vpack.c.bf16 %v2615_v6, %v2614_v3  ;;  %v2616_v9 = vld [vmem:[%s4302_s11 + $0x20] sm:$0xff] }
0x1775   :  { %3430 = vmatprep.subr.bf16.mxu1 %v3429_v46  ;;  %3467 = vmatpush3.bf16.msra.mxu0 %v3466_v5  ;;  %v2617_v46 = vld [vmem:[%s4302_s11 + $0x28] sm:$0xff] }
0x1776   :  { %3468 = vmatprep.subr.bf16.mxu0 %v3618_v0  ;;  %v3472_v11 = vpack.c.bf16 %v2617_v46, %v2616_v9 }
0x1778   :  { %3432 = vmatpush1.bf16.msra.mxu1 %v3431_v14  ;;  %v2619_v14 = vld [vmem:[%s4302_s11 + $0x38] sm:$0xff] }
0x1779   :  { %3434 = vmatprep.subr.bf16.mxu1 %v3433_v17  ;;  %3470 = vmatpush3.bf16.msra.mxu0 %v3469_v7  ;;  %v3478_v17 = vpack.c.bf16 %v2621_v16, %v2620_v34 }
0x177a   :  { %3471 = vmatprep.subr.bf16.mxu0 %v3618_v0 }
0x177d   :  { %3473 = vmatpush3.bf16.msra.mxu0 %v3472_v11 }
0x177e   :  { %v3609_v55 = vpop.eup %3608  ;;  %3474 = vmatprep.subr.bf16.mxu0 %v3618_v0 }
0x177f   :  { %v2382_v57 = vadd.f32 1.0, %v3609_v55  ;;  %v3455_v55 = vpack.c.bf16 %v2513_v53, %v2512_v49 }
0x1781   :  { %3610 = vrcp.f32 %v2382_v57  ;;  %v3457_v57 = vpack.c.bf16 %v2531_v52, %v2530_v54 }
0x178b   :  { %v3611_v58 = vpop.eup %3610 }
0x178c   :  { %v2385_v59 = vmul.f32 2.0, %v3611_v58  ;;  %v2387_v61 = vmul.f32 %v3611_v58, %v2124_v4  ;;  %v2527_v4 = vld [vmem:[%s4301_s9 + $0xc8] sm:$0xff] }
0x178d   :  { %v3449_v44 = vpack.c.bf16 %v2527_v4, %v2526_v38  ;;  %v2785_v38 = vld [vmem:[%s4304_s10] ss:$0 sm:$0xff] }
0x178e   :  { %v2783_v56 = vadd.f32 -1.0, %v2385_v59  ;;  %v2515_v59 = vld [vmem:[%s4301_s9 + $0x68] sm:$0xff] }
0x1790   :  { %2389 = vrot.lane.b32.xlu0 %v2783_v56, %s3621_s22 }
0x1802   :  { %v2390_v60 = vpop.permute.xlu0 %2389 }
0x1803   :  { %v2392_v45 = vmul.f32 %v3611_v58, %v2390_v60  ;;  %v2532_v60 = vld [vmem:[%s4301_s9 + $0xf0] sm:$0xff] }
0x1805   :  { %2394 = vrot.lane.b32.xlu1 %v2392_v45, %s3622_s3  ;;  %v2533_v45 = vld [vmem:[%s4301_s9 + $0xf8] sm:$0xff] }
0x1877   :  { %v2395_v8 = vpop.permute.xlu1 %2394 }
0x1878   :  { %v2397_v63 = vadd.f32 %v2395_v8, %v2387_v61  ;;  %v3461_v61 = vpack.c.bf16 %v2533_v45, %v2532_v60  ;;  %v2516_v8 = vld [vmem:[%s4301_s9 + $0x70] sm:$0xff] }
0x187a   :  { %3612 = vtanh.f32 %v2397_v63  ;;  %v2517_v63 = vld [vmem:[%s4301_s9 + $0x78] sm:$0xff] }
0x187b   :  { %v3463_v62 = vpack.c.bf16 %v2517_v63, %v2516_v8 }
0x1884   :  { %v3613_v15 = vpop.eup %3612 }
0x1885   :  { %2400 = vrot.lane.b32.xlu0 %v3613_v15, %s3621_s22  ;;  %v3475_v15 = vpack.c.bf16 %v2619_v14, %v2618_v13 }
0x1887   :  { %3476 = vmatpush3.bf16.msra.mxu0 %v3475_v15 }
0x1888   :  { %3477 = vmatprep.subr.bf16.mxu0 %v3618_v0 }
0x188b   :  { %3479 = vmatpush3.bf16.msra.mxu0 %v3478_v17 }
0x188c   :  { %3480 = vmatprep.subr.bf16.mxu0 %v3618_v0 }
0x18f7   :  { %v2401_v18 = vpop.permute.xlu0 %2400 }
0x18f8   :  { %v2403_v19 = vmul.f32 %v3611_v58, %v2401_v18  ;;  %v2514_v58 = vld [vmem:[%s4301_s9 + $0x60] sm:$0xff]  ;;  %v2622_v18 = vld [vmem:[%s4302_s11 + $0x50] sm:$0xff] }
0x18f9   :  { %v3459_v56 = vpack.c.bf16 %v2515_v59, %v2514_v58 }
0x18fa   :  { %2425 = vrot.lane.b32.xlu1 %v2403_v19, %s3622_s3  ;;  %v2623_v19 = vld [vmem:[%s4302_s11 + $0x58] sm:$0xff] }
0x18fb   :  { %v3481_v20 = vpack.c.bf16 %v2623_v19, %v2622_v18 }
0x18fd   :  { %3482 = vmatpush3.bf16.msra.mxu0 %v3481_v20 }
0x18fe   :  { %3483 = vmatprep.subr.bf16.mxu0 %v3618_v0 }
0x1901   :  { %3485 = vmatpush3.bf16.msra.mxu0 %v3484_v28 }
0x1902   :  { %3486 = vmatprep.subr.bf16.mxu0 %v3618_v0  ;;  %v2786_v0 = vld [vmem:[%s4305_s12] ss:$0 sm:$0xff] }
0x196c   :  { %v2426_v26 = vpop.permute.xlu1 %2425 }
0x196d   :  { %2784 = vmatmul.mubr.msk.f32.vlgmr.msra.gmra.mrb[16].mxu1 %vm216_vm3, %v2426_v26 }
0x196e   :  { %3436 = vmatpush3.bf16.msra.mxu1 %v3435_v23  ;;  %v2412_v23 = vld [vmem:[%s4303_s8] sm:$0x3] }
0x196f   :  { %3438 = vmatprep.subr.bf16.mxu1 %v3437_v24  ;;  %v2420_v24 = vsub.s32 1, %v2415_v39  ;;  %v2417_v25 = vrot.slane %v2412_v23, %v2416_v22 }
0x1971   :  { %v2421_v47 = vrot.slane %v2412_v23, %v2420_v24 }
0x1972   :  { %3440 = vmatpush3.bf16.msra.mxu1 %v3439_v27 }
0x1973   :  { %3442 = vmatprep.subr.bf16.mxu1 %v3441_v29 }
0x1976   :  { %3444 = vmatpush3.bf16.msra.mxu1 %v3443_v33  ;;  %v2626_v33 = vld [vmem:[%s4302_s11 + $0x70] sm:$0xff] }
0x1977   :  { %3446 = vmatprep.subr.bf16.mxu1 %v3445_v35  ;;  %v2627_v35 = vld [vmem:[%s4302_s11 + $0x78] sm:$0xff] }
0x1978   :  { %v3487_v36 = vpack.c.bf16 %v2627_v35, %v2626_v33 }
0x197a   :  { %3448 = vmatpush3.bf16.msra.mxu1 %v3447_v40  ;;  %3488 = vmatpush3.bf16.msra.mxu0 %v3487_v36 }
0x197b   :  { %3450 = vmatprep.subr.bf16.mxu1 %v3449_v44 }
0x197e   :  { %3452 = vmatpush3.bf16.msra.mxu1 %v3451_v50 }
0x197f   :  { %3454 = vmatprep.subr.bf16.mxu1 %v3453_v51 }
0x1982   :  { %3456 = vmatpush3.bf16.msra.mxu1 %v3455_v55 }
0x1983   :  { %3458 = vmatprep.subr.bf16.mxu1 %v3457_v57 }
0x1986   :  { %3460 = vmatpush3.bf16.msra.mxu1 %v3459_v56 }
0x1987   :  { %3462 = vmatprep.subr.bf16.mxu1 %v3461_v61 }
0x198a   :  { %3464 = vmatpush3.bf16.msra.mxu1 %v3463_v62 }
0x1a40   :  { %v2495_v26 = vpop.f32.mrb[16].mxu1 }
0x1a41   :  { %v2496_v12 = vadd.f32 %v2495_v26, %v2417_v25  ;;  %v2497_v48 = vpop.f32.mrb[17].mxu1 }
0x1a42   :  { %v2498_v27 = vadd.f32 %v2497_v48, %v2421_v47 }
0x1a43   :  { %v2500_v30 = vmax.f32 %v2496_v12, 0.0 }
0x1a44   :  { %v2501_v29 = vmax.f32 %v2498_v27, 0.0 }
0x1a46   :  { %2605 = vmatprep.mubr.f32.mxu1 %v2501_v29 }
0x1a47   :  { %2606 = vmatmul.mubr.f32.vlgmr.msra.gmra.mrb[18].mxu1 %v2500_v30 }
0x1b1a   :  { %v2948_v37 = vpop.f32.mrb[18].mxu1 }
0x1b1b   :  { %v2949_v4 = vpop.f32.mrb[19].mxu1 }
0x1b1c   :  { %v2950_v40 = vadd.f32 %v2949_v4, %v2948_v37 }
0x1b1e   :  { %v2608_v44 = vadd.f32 %v2950_v40, %v2785_v38 }
0x1b20   :  { %v2611_v41 = vmax.f32 %v2608_v44, 0.0 }
0x1b22   :  { %3279 = vmatmul.mubr.f32.vlgmr.msra.gmra.mrb[24].mxu0 %v2611_v41 }
0x1bf5   :  { %v2701_v42 = vpop.f32.mrb[24].mxu0 }
0x1bf6   :  { %v2702_v10 = vadd.f32 %v2786_v0, %v2701_v42  ;;  %v3280_v43 = vpop.f32.mrb[25].mxu0 }
0x1bf8   :  { %2705 = vmax.xlane.f32.xlu0 %v2702_v10 }
0x1c85   :  { %v2706_v50 = vpop.xlane.xlu0 %2705 }
0x1c86   :  { %v2707_v51 = vsub.f32 %v2702_v10, %v2706_v50 }
0x1c88   :  { %v2708_v49 = vmul.f32 1.442695, %v2707_v51 }
0x1c8a   :  { %3614 = vpow2.f32 %v2708_v49 }
0x1c94   :  { %v3615_v53 = vpop.eup %3614 }
0x1c95   :  { %2710 = vadd.xlane.f32.xlu1 %v3615_v53 }
0x1d22   :  { %v2711_v54 = vpop.xlane.xlu1 %2710 }
0x1d23   :  { %3616 = vrcp.f32 %v2711_v54 }
0x1d2d   :  { %v3617_v52 = vpop.eup %3616 }
0x1d2e   :  { %v2713_v55 = vmul.f32 %v3617_v52, %v3615_v53 }
0x1d30   :  { %2714 = vst [vmem:[%s4306_s13] sm:$0xff] %v2713_v55 }

</bundles_post_ra>
